<compile_context>
chip_gen: v7x
topology: tpu7x:2x2x1
jax: 0.10.0
libtpu: 0.0.40
codegen_flags: <defaults>
</compile_context>

<pallas_src>
import functools

import jax
import jax.numpy as jnp
from jax.experimental import pallas as pl
from jax.experimental.pallas import tpu as pltpu


def _round_up(x, m):
    return (x + m - 1) // m * m


def _mlp_stats_kernel(x_ref, w1_ref, b1_ref, w2_ref, b2_ref, w3_ref, b3_ref,
                      z_ref, sum_ref, sumsq_ref, *, tile_m, m_valid, mask_rows):
    """Fused 3-layer MLP (+ReLU), bf16 MXU matmuls / f32 accum, per-tile channel stats."""
    i = pl.program_id(0)

    x = x_ref[...]  # bf16 (tile_m, Cp)
    h = jnp.dot(x, w1_ref[...], preferred_element_type=jnp.float32) + b1_ref[...]
    h = jnp.maximum(h, 0.0)
    h = jnp.dot(h.astype(jnp.bfloat16), w2_ref[...],
                preferred_element_type=jnp.float32) + b2_ref[...]
    h = jnp.maximum(h, 0.0)
    z = jnp.dot(h.astype(jnp.bfloat16), w3_ref[...],
                preferred_element_type=jnp.float32) + b3_ref[...]
    z = jnp.maximum(z, 0.0)

    if mask_rows:
        # Zero padding rows so they pollute neither stats nor output.
        row = jax.lax.broadcasted_iota(jnp.int32, z.shape, 0) + i * tile_m
        z = jnp.where(row < m_valid, z, 0.0)

    z_ref[...] = z
    # Per-tile partial statistics -> no cross-iteration dependency (megacore safe).
    sum_ref[...] = jnp.sum(z, axis=0, keepdims=True)[None]
    sumsq_ref[...] = jnp.sum(z * z, axis=0, keepdims=True)[None]
    # TODO(synk): E[z^2]-E[z]^2 in f32 can lose precision when |mean| >> std;
    # switch to a centered / Welford accumulation for very large batches.


def _bn_relu_kernel(z_ref, scale_ref, shift_ref, y_ref):
    """Elementwise batch-norm (precomputed per-channel scale/shift) + ReLU."""
    y_ref[...] = jnp.maximum(z_ref[...] * scale_ref[...] + shift_ref[...], 0.0)


def init_fc_params(key, dims):
    """Deterministic synthetic parameters matching PyTorch FC(dims) shapes."""
    hidden = dims * 3
    ks = jax.random.split(key, 6)

    def linear(kw, kb, fan_in, fan_out):
        bound = 1.0 / jnp.sqrt(float(fan_in))
        # stored already transposed: (in, out) so kernel does x @ W_T
        w_t = jax.random.uniform(kw, (fan_in, fan_out), jnp.float32, -bound, bound)
        b = jax.random.uniform(kb, (1, fan_out), jnp.float32, -bound, bound)
        return w_t, b

    w1t, b1 = linear(ks[0], ks[1], dims, hidden)
    w2t, b2 = linear(ks[2], ks[3], hidden, hidden)
    w3t, b3 = linear(ks[4], ks[5], hidden, dims)
    gamma = jnp.ones((1, dims), jnp.float32)   # BatchNorm2d default weight
    beta = jnp.zeros((1, dims), jnp.float32)   # BatchNorm2d default bias
    return dict(w1t=w1t, b1=b1, w2t=w2t, b2=b2, w3t=w3t, b3=b3,
                gamma=gamma, beta=beta)


@functools.partial(jax.jit, static_argnames=("tile_m", "max_bn_tile"))
def fc_forward(x, params, tile_m=256, max_bn_tile=1024, eps=1e-5):
    """x: NCHW float32 -> y: NCHW float32 (FC.forward, BN in training mode)."""
    B, C, H, W = x.shape
    dims = C
    hidden = 3 * dims
    M = B * H * W

    # Lane-dense padded sizes; row padding to a multiple of the MLP tile.
    dims_p = _round_up(dims, 128)
    hidden_p = _round_up(hidden, 128)
    M_pad = _round_up(M, tile_m)
    num_tiles = M_pad // tile_m

    # NCHW -> NHWC -> (M, C), pad rows/channels with zeros, cast to bf16.
    x2d = jnp.transpose(x, (0, 2, 3, 1)).reshape(M, dims)
    x2d = jnp.pad(x2d, ((0, M_pad - M), (0, dims_p - dims))).astype(jnp.bfloat16)

    def pad2(a, r, c, cv=0.0):
        return jnp.pad(a, ((0, r - a.shape[0]), (0, c - a.shape[1])),
                       constant_values=cv)

    w1t = pad2(params["w1t"], dims, hidden_p)
    w1t = jnp.pad(w1t, ((0, dims_p - dims), (0, 0))).astype(jnp.bfloat16)
    b1 = pad2(params["b1"], 1, hidden_p)
    w2t = pad2(params["w2t"], hidden_p, hidden_p).astype(jnp.bfloat16)
    b2 = pad2(params["b2"], 1, hidden_p)
    w3t = pad2(params["w3t"], hidden_p, dims_p).astype(jnp.bfloat16)
    b3 = pad2(params["b3"], 1, dims_p)
    gamma_p = pad2(params["gamma"], 1, dims_p, cv=1.0)
    beta_p = pad2(params["beta"], 1, dims_p)

    # ---- VMEM budget (double-buffer everything, generous headroom, <=64MiB) ----
    mlp_bytes = (
        2 * tile_m * dims_p * 2                      # x tiles (bf16)
        + 2 * tile_m * dims_p * 4                    # z tiles (f32)
        + 2 * (dims_p * hidden_p + hidden_p * hidden_p + hidden_p * dims_p) * 2
        + 2 * (2 * hidden_p + dims_p) * 4            # biases
        + 2 * 2 * dims_p * 4                         # partial stats
        + 2 * tile_m * hidden_p * 4                  # live intermediate h
    )
    mlp_vmem = int(min(2 * mlp_bytes + (16 << 20), 64 << 20))

    grid = (num_tiles,)
    rep = lambda i: (0, 0)  # resident (un-tiled) operands

    z, s_part, ss_part = pl.pallas_call(
        functools.partial(_mlp_stats_kernel, tile_m=tile_m, m_valid=M,
                          mask_rows=(M_pad != M)),
        out_shape=(jax.ShapeDtypeStruct((M_pad, dims_p), jnp.float32),
                   jax.ShapeDtypeStruct((num_tiles, 1, dims_p), jnp.float32),
                   jax.ShapeDtypeStruct((num_tiles, 1, dims_p), jnp.float32)),
        grid_spec=pltpu.PrefetchScalarGridSpec(
            num_scalar_prefetch=0,
            grid=grid,
            in_specs=[
                pl.BlockSpec((tile_m, dims_p), lambda i: (i, 0)),   # x rows
                pl.BlockSpec((dims_p, hidden_p), rep),              # W1^T
                pl.BlockSpec((1, hidden_p), rep),                   # b1
                pl.BlockSpec((hidden_p, hidden_p), rep),            # W2^T
                pl.BlockSpec((1, hidden_p), rep),                   # b2
                pl.BlockSpec((hidden_p, dims_p), rep),              # W3^T
                pl.BlockSpec((1, dims_p), rep),                     # b3
            ],
            out_specs=[
                pl.BlockSpec((tile_m, dims_p), lambda i: (i, 0)),       # z rows
                pl.BlockSpec((1, 1, dims_p), lambda i: (i, 0, 0)),      # sum partials
                pl.BlockSpec((1, 1, dims_p), lambda i: (i, 0, 0)),      # sumsq partials
            ],
        ),
        compiler_params=pltpu.CompilerParams(
            dimension_semantics=("parallel",),
            vmem_limit_bytes=mlp_vmem),
    )(x2d, w1t, b1, w2t, b2, w3t, b3)

    # Tiny per-channel BN statistics fold (training-mode: biased variance).
    s = jnp.sum(s_part, axis=0)       # (1, dims_p)
    ss = jnp.sum(ss_part, axis=0)     # (1, dims_p)
    mean = s / M
    var = jnp.maximum(ss / M - mean * mean, 0.0)
    inv = gamma_p * jax.lax.rsqrt(var + eps)
    scale = inv
    shift = beta_p - mean * inv

    # Bandwidth-bound BN+ReLU pass: biggest row tile (multiple of tile_m)
    # that divides M_pad and does not exceed max_bn_tile.
    tile_bn = tile_m
    for mult in (8, 4, 2):
        cand = tile_m * mult
        if cand <= max_bn_tile and M_pad % cand == 0:
            tile_bn = cand
            break

    bn_bytes = 2 * (2 * tile_bn * dims_p * 4) + 4 * dims_p * 4
    bn_vmem = int(min(2 * bn_bytes + (16 << 20), 64 << 20))

    y2d = pl.pallas_call(
        _bn_relu_kernel,
        out_shape=jax.ShapeDtypeStruct((M_pad, dims_p), jnp.float32),
        grid_spec=pltpu.PrefetchScalarGridSpec(
            num_scalar_prefetch=0,
            grid=(M_pad // tile_bn,),
            in_specs=[
                pl.BlockSpec((tile_bn, dims_p), lambda i: (i, 0)),
                pl.BlockSpec((1, dims_p), rep),
                pl.BlockSpec((1, dims_p), rep),
            ],
            out_specs=pl.BlockSpec((tile_bn, dims_p), lambda i: (i, 0)),
        ),
        input_output_aliases={0: 0},   # y overwrites z (z is dead afterwards)
        compiler_params=pltpu.CompilerParams(
            dimension_semantics=("parallel",),
            vmem_limit_bytes=bn_vmem),
    )(z, scale, shift)

    # (M_pad, C_pad) -> slice valid region -> NHWC -> NCHW
    y2d = y2d[:M, :dims]
    return jnp.transpose(y2d.reshape(B, H, W, dims), (0, 3, 1, 2))


def _reference_forward(x, params, eps=1e-5):
    """Pure-JAX reference of FC.forward (bf16 matmuls to mirror the kernel)."""
    B, C, H, W = x.shape
    bf16 = jnp.bfloat16
    h = jnp.transpose(x, (0, 2, 3, 1)).reshape(-1, C)  # (M, C)
    h = jnp.dot(h.astype(bf16), params["w1t"].astype(bf16),
                preferred_element_type=jnp.float32) + params["b1"]
    h = jax.nn.relu(h)
    h = jnp.dot(h.astype(bf16), params["w2t"].astype(bf16),
                preferred_element_type=jnp.float32) + params["b2"]
    h = jax.nn.relu(h)
    h = jnp.dot(h.astype(bf16), params["w3t"].astype(bf16),
                preferred_element_type=jnp.float32) + params["b3"]
    z2d = jax.nn.relu(h)
    z = jnp.transpose(z2d.reshape(B, H, W, C), (0, 3, 1, 2))  # NCHW
    mean = jnp.mean(z, axis=(0, 2, 3), keepdims=True)
    var = jnp.mean((z - mean) ** 2, axis=(0, 2, 3), keepdims=True)
    g = params["gamma"][0].reshape(1, C, 1, 1)
    b = params["beta"][0].reshape(1, C, 1, 1)
    zn = (z - mean) * jax.lax.rsqrt(var + eps) * g + b
    return jax.nn.relu(zn)


if __name__ == "__main__":
    B, dims, H, W = 2, 4, 16, 16          # N*H*W = 512 rows -> two 256-row tiles
    key = jax.random.PRNGKey(0)
    kx, kp = jax.random.split(key)

    x = jax.random.normal(kx, (B, dims, H, W), jnp.float32)
    params = init_fc_params(kp, dims)

    y = fc_forward(x, params)
    y = jax.block_until_ready(y)

    y_ref = _reference_forward(x, params)
    assert y.shape == (B, dims, H, W)
    assert jnp.allclose(y, y_ref, atol=5e-3, rtol=5e-3), "mismatch vs reference"

    print("KERNEL_OK")
</pallas_src>

<mosaic_0001>
module attributes {stable_mosaic.version = 11 : i64} {
  func.func @_mlp_stats_kernel(%arg0: i32, %arg1: memref<256x128xbf16, #tpu.memory_space<vmem>>, %arg2: memref<128x128xbf16, #tpu.memory_space<vmem>>, %arg3: memref<1x128xf32, #tpu.memory_space<vmem>>, %arg4: memref<128x128xbf16, #tpu.memory_space<vmem>>, %arg5: memref<1x128xf32, #tpu.memory_space<vmem>>, %arg6: memref<128x128xbf16, #tpu.memory_space<vmem>>, %arg7: memref<1x128xf32, #tpu.memory_space<vmem>>, %arg8: memref<256x128xf32, #tpu.memory_space<vmem>>, %arg9: memref<1x1x128xf32, #tpu.memory_space<vmem>>, %arg10: memref<1x1x128xf32, #tpu.memory_space<vmem>>) attributes {dimension_semantics = [#tpu.dimension_semantics<parallel>], iteration_bounds = array<i64: 2>, scalar_prefetch = 0 : i64, scratch_operands = 0 : i64, tpu.core_type = #tpu.core_type<tc>, window_params = [{transform_indices = @transform_0, window_bounds = array<i64: 256, 128>}, {pipeline_mode = #tpu.pipeline_mode<synchronous>, transform_indices = @transform_1, window_bounds = array<i64: 128, 128>}, {pipeline_mode = #tpu.pipeline_mode<synchronous>, transform_indices = @transform_2, window_bounds = array<i64: 1, 128>}, {pipeline_mode = #tpu.pipeline_mode<synchronous>, transform_indices = @transform_3, window_bounds = array<i64: 128, 128>}, {pipeline_mode = #tpu.pipeline_mode<synchronous>, transform_indices = @transform_4, window_bounds = array<i64: 1, 128>}, {pipeline_mode = #tpu.pipeline_mode<synchronous>, transform_indices = @transform_5, window_bounds = array<i64: 128, 128>}, {pipeline_mode = #tpu.pipeline_mode<synchronous>, transform_indices = @transform_6, window_bounds = array<i64: 1, 128>}, {transform_indices = @transform_7, window_bounds = array<i64: 256, 128>}, {transform_indices = @transform_8, window_bounds = array<i64: 1, 1, 128>}, {transform_indices = @transform_9, window_bounds = array<i64: 1, 1, 128>}]} {
    %c0 = arith.constant 0 : index
    %c0_0 = arith.constant 0 : index
    %0 = vector.load %arg1[%c0, %c0_0] : memref<256x128xbf16, #tpu.memory_space<vmem>>, vector<256x128xbf16>
    %c0_1 = arith.constant 0 : index
    %c0_2 = arith.constant 0 : index
    %1 = vector.load %arg2[%c0_1, %c0_2] : memref<128x128xbf16, #tpu.memory_space<vmem>>, vector<128x128xbf16>
    %cst = arith.constant dense<0.000000e+00> : vector<256x128xf32>
    %2 = tpu.matmul %0, %1, %cst {dimension_numbers = #tpu.dot_dimension_numbers<[1], [0], [0], [1], [0, 0, 1, 1], [], []>} : vector<256x128xbf16>, vector<128x128xbf16>, vector<256x128xf32> -> vector<256x128xf32>
    %c0_3 = arith.constant 0 : index
    %c0_4 = arith.constant 0 : index
    %3 = vector.load %arg3[%c0_3, %c0_4] : memref<1x128xf32, #tpu.memory_space<vmem>>, vector<1x128xf32>
    %4 = vector.broadcast %3 : vector<1x128xf32> to vector<256x128xf32>
    %5 = arith.addf %2, %4 : vector<256x128xf32>
    %cst_5 = arith.constant 0.000000e+00 : f32
    %6 = vector.broadcast %cst_5 : f32 to vector<256x128xf32>
    %7 = arith.maximumf %5, %6 : vector<256x128xf32>
    %8 = arith.truncf %7 : vector<256x128xf32> to vector<256x128xbf16>
    %c0_6 = arith.constant 0 : index
    %c0_7 = arith.constant 0 : index
    %9 = vector.load %arg4[%c0_6, %c0_7] : memref<128x128xbf16, #tpu.memory_space<vmem>>, vector<128x128xbf16>
    %cst_8 = arith.constant dense<0.000000e+00> : vector<256x128xf32>
    %10 = tpu.matmul %8, %9, %cst_8 {dimension_numbers = #tpu.dot_dimension_numbers<[1], [0], [0], [1], [0, 0, 1, 1], [], []>} : vector<256x128xbf16>, vector<128x128xbf16>, vector<256x128xf32> -> vector<256x128xf32>
    %c0_9 = arith.constant 0 : index
    %c0_10 = arith.constant 0 : index
    %11 = vector.load %arg5[%c0_9, %c0_10] : memref<1x128xf32, #tpu.memory_space<vmem>>, vector<1x128xf32>
    %12 = vector.broadcast %11 : vector<1x128xf32> to vector<256x128xf32>
    %13 = arith.addf %10, %12 : vector<256x128xf32>
    %cst_11 = arith.constant 0.000000e+00 : f32
    %14 = vector.broadcast %cst_11 : f32 to vector<256x128xf32>
    %15 = arith.maximumf %13, %14 : vector<256x128xf32>
    %16 = arith.truncf %15 : vector<256x128xf32> to vector<256x128xbf16>
    %c0_12 = arith.constant 0 : index
    %c0_13 = arith.constant 0 : index
    %17 = vector.load %arg6[%c0_12, %c0_13] : memref<128x128xbf16, #tpu.memory_space<vmem>>, vector<128x128xbf16>
    %cst_14 = arith.constant dense<0.000000e+00> : vector<256x128xf32>
    %18 = tpu.matmul %16, %17, %cst_14 {dimension_numbers = #tpu.dot_dimension_numbers<[1], [0], [0], [1], [0, 0, 1, 1], [], []>} : vector<256x128xbf16>, vector<128x128xbf16>, vector<256x128xf32> -> vector<256x128xf32>
    %c0_15 = arith.constant 0 : index
    %c0_16 = arith.constant 0 : index
    %19 = vector.load %arg7[%c0_15, %c0_16] : memref<1x128xf32, #tpu.memory_space<vmem>>, vector<1x128xf32>
    %20 = vector.broadcast %19 : vector<1x128xf32> to vector<256x128xf32>
    %21 = arith.addf %18, %20 : vector<256x128xf32>
    %cst_17 = arith.constant 0.000000e+00 : f32
    %22 = vector.broadcast %cst_17 : f32 to vector<256x128xf32>
    %23 = arith.maximumf %21, %22 : vector<256x128xf32>
    %c0_18 = arith.constant 0 : index
    %c0_19 = arith.constant 0 : index
    %24 = vector.load %arg8[%c0_18, %c0_19] : memref<256x128xf32, #tpu.memory_space<vmem>>, vector<256x128xf32>
    tpu.vector_store %arg8[%c0_18, %c0_19], %23 {strides = array<i32>} : memref<256x128xf32, #tpu.memory_space<vmem>>, vector<256x128xf32>,
    %cst_20 = arith.constant dense<0.000000e+00> : vector<128xf32>
    %25 = vector.multi_reduction <add>, %23, %cst_20 [0] : vector<256x128xf32> to vector<128xf32>
    %26 = vector.shape_cast %25 : vector<128xf32> to vector<1x128xf32>
    %27 = vector.shape_cast %26 : vector<1x128xf32> to vector<1x1x128xf32>
    %c0_21 = arith.constant 0 : index
    %c0_22 = arith.constant 0 : index
    %c0_23 = arith.constant 0 : index
    %28 = vector.load %arg9[%c0_21, %c0_22, %c0_23] : memref<1x1x128xf32, #tpu.memory_space<vmem>>, vector<1x1x128xf32>
    tpu.vector_store %arg9[%c0_21, %c0_22, %c0_23], %27 {strides = array<i32>} : memref<1x1x128xf32, #tpu.memory_space<vmem>>, vector<1x1x128xf32>,
    %29 = arith.mulf %23, %23 : vector<256x128xf32>
    %cst_24 = arith.constant dense<0.000000e+00> : vector<128xf32>
    %30 = vector.multi_reduction <add>, %29, %cst_24 [0] : vector<256x128xf32> to vector<128xf32>
    %31 = vector.shape_cast %30 : vector<128xf32> to vector<1x128xf32>
    %32 = vector.shape_cast %31 : vector<1x128xf32> to vector<1x1x128xf32>
    %c0_25 = arith.constant 0 : index
    %c0_26 = arith.constant 0 : index
    %c0_27 = arith.constant 0 : index
    %33 = vector.load %arg10[%c0_25, %c0_26, %c0_27] : memref<1x1x128xf32, #tpu.memory_space<vmem>>, vector<1x1x128xf32>
    tpu.vector_store %arg10[%c0_25, %c0_26, %c0_27], %32 {strides = array<i32>} : memref<1x1x128xf32, #tpu.memory_space<vmem>>, vector<1x1x128xf32>,
    return
  }
  func.func @transform_0(%arg0: i32) -> (i32, i32) {
    %c0_i32 = arith.constant 0 : i32
    %c0_i32_0 = arith.constant 0 : i32
    return %arg0, %c0_i32 : i32, i32
  }
  func.func @transform_1(%arg0: i32) -> (i32, i32) {
    %c0_i32 = arith.constant 0 : i32
    %c0_i32_0 = arith.constant 0 : i32
    %c0_i32_1 = arith.constant 0 : i32
    return %c0_i32, %c0_i32_0 : i32, i32
  }
  func.func @transform_2(%arg0: i32) -> (i32, i32) {
    %c0_i32 = arith.constant 0 : i32
    %c0_i32_0 = arith.constant 0 : i32
    %c0_i32_1 = arith.constant 0 : i32
    return %c0_i32, %c0_i32_0 : i32, i32
  }
  func.func @transform_3(%arg0: i32) -> (i32, i32) {
    %c0_i32 = arith.constant 0 : i32
    %c0_i32_0 = arith.constant 0 : i32
    %c0_i32_1 = arith.constant 0 : i32
    return %c0_i32, %c0_i32_0 : i32, i32
  }
  func.func @transform_4(%arg0: i32) -> (i32, i32) {
    %c0_i32 = arith.constant 0 : i32
    %c0_i32_0 = arith.constant 0 : i32
    %c0_i32_1 = arith.constant 0 : i32
    return %c0_i32, %c0_i32_0 : i32, i32
  }
  func.func @transform_5(%arg0: i32) -> (i32, i32) {
    %c0_i32 = arith.constant 0 : i32
    %c0_i32_0 = arith.constant 0 : i32
    %c0_i32_1 = arith.constant 0 : i32
    return %c0_i32, %c0_i32_0 : i32, i32
  }
  func.func @transform_6(%arg0: i32) -> (i32, i32) {
    %c0_i32 = arith.constant 0 : i32
    %c0_i32_0 = arith.constant 0 : i32
    %c0_i32_1 = arith.constant 0 : i32
    return %c0_i32, %c0_i32_0 : i32, i32
  }
  func.func @transform_7(%arg0: i32) -> (i32, i32) {
    %c0_i32 = arith.constant 0 : i32
    %c0_i32_0 = arith.constant 0 : i32
    return %arg0, %c0_i32 : i32, i32
  }
  func.func @transform_8(%arg0: i32) -> (i32, i32, i32) {
    %c0_i32 = arith.constant 0 : i32
    %c0_i32_0 = arith.constant 0 : i32
    %c0_i32_1 = arith.constant 0 : i32
    return %arg0, %c0_i32, %c0_i32_0 : i32, i32, i32
  }
  func.func @transform_9(%arg0: i32) -> (i32, i32, i32) {
    %c0_i32 = arith.constant 0 : i32
    %c0_i32_0 = arith.constant 0 : i32
    %c0_i32_1 = arith.constant 0 : i32
    return %arg0, %c0_i32, %c0_i32_0 : i32, i32, i32
  }
}

module attributes {stable_mosaic.version = 11 : i64} {
  func.func @_bn_relu_kernel(%arg0: i32, %arg1: memref<512x128xf32, #tpu.memory_space<vmem>>, %arg2: memref<1x128xf32, #tpu.memory_space<vmem>>, %arg3: memref<1x128xf32, #tpu.memory_space<vmem>>, %arg4: memref<512x128xf32, #tpu.memory_space<vmem>>) attributes {dimension_semantics = [#tpu.dimension_semantics<parallel>], iteration_bounds = array<i64: 1>, scalar_prefetch = 0 : i64, scratch_operands = 0 : i64, tpu.core_type = #tpu.core_type<tc>, window_params = [{transform_indices = @transform_0, window_bounds = array<i64: 512, 128>}, {pipeline_mode = #tpu.pipeline_mode<synchronous>, transform_indices = @transform_1, window_bounds = array<i64: 1, 128>}, {pipeline_mode = #tpu.pipeline_mode<synchronous>, transform_indices = @transform_2, window_bounds = array<i64: 1, 128>}, {transform_indices = @transform_3, window_bounds = array<i64: 512, 128>}]} {
    %c0 = arith.constant 0 : index
    %c0_0 = arith.constant 0 : index
    %0 = vector.load %arg1[%c0, %c0_0] : memref<512x128xf32, #tpu.memory_space<vmem>>, vector<512x128xf32>
    %c0_1 = arith.constant 0 : index
    %c0_2 = arith.constant 0 : index
    %1 = vector.load %arg2[%c0_1, %c0_2] : memref<1x128xf32, #tpu.memory_space<vmem>>, vector<1x128xf32>
    %2 = vector.broadcast %1 : vector<1x128xf32> to vector<512x128xf32>
    %3 = arith.mulf %0, %2 : vector<512x128xf32>
    %c0_3 = arith.constant 0 : index
    %c0_4 = arith.constant 0 : index
    %4 = vector.load %arg3[%c0_3, %c0_4] : memref<1x128xf32, #tpu.memory_space<vmem>>, vector<1x128xf32>
    %5 = vector.broadcast %4 : vector<1x128xf32> to vector<512x128xf32>
    %6 = arith.addf %3, %5 : vector<512x128xf32>
    %cst = arith.constant 0.000000e+00 : f32
    %7 = vector.broadcast %cst : f32 to vector<512x128xf32>
    %8 = arith.maximumf %6, %7 : vector<512x128xf32>
    %c0_5 = arith.constant 0 : index
    %c0_6 = arith.constant 0 : index
    %9 = vector.load %arg4[%c0_5, %c0_6] : memref<512x128xf32, #tpu.memory_space<vmem>>, vector<512x128xf32>
    tpu.vector_store %arg4[%c0_5, %c0_6], %8 {strides = array<i32>} : memref<512x128xf32, #tpu.memory_space<vmem>>, vector<512x128xf32>,
    return
  }
  func.func @transform_0(%arg0: i32) -> (i32, i32) {
    %c0_i32 = arith.constant 0 : i32
    %c0_i32_0 = arith.constant 0 : i32
    return %arg0, %c0_i32 : i32, i32
  }
  func.func @transform_1(%arg0: i32) -> (i32, i32) {
    %c0_i32 = arith.constant 0 : i32
    %c0_i32_0 = arith.constant 0 : i32
    %c0_i32_1 = arith.constant 0 : i32
    return %c0_i32, %c0_i32_0 : i32, i32
  }
  func.func @transform_2(%arg0: i32) -> (i32, i32) {
    %c0_i32 = arith.constant 0 : i32
    %c0_i32_0 = arith.constant 0 : i32
    %c0_i32_1 = arith.constant 0 : i32
    return %c0_i32, %c0_i32_0 : i32, i32
  }
  func.func @transform_3(%arg0: i32) -> (i32, i32) {
    %c0_i32 = arith.constant 0 : i32
    %c0_i32_0 = arith.constant 0 : i32
    return %arg0, %c0_i32 : i32, i32
  }
}

</mosaic_0001>

<bundles_post_ra>
// kernel: fc_forward.3
= control target key start
LH: loop header
LB: loop body
LE: loop exit
PB: predicated region body
PF: predicated region fallthrough
CT: control target
= control target key end

     0   :  { %s896_s0 = inlined_call_operand.vmem [shape: f32[512,128], index: 0, kind: input, shape index: {}, may-alias: {0,3}]   ;;  %s897_s1 = inlined_call_operand.vmem [shape: f32[1,128], index: 1, kind: input, shape index: {}]   ;;  %s898_s2 = inlined_call_operand.vmem [shape: f32[1,128], index: 2, kind: input, shape index: {}]   ;;  %s899_s3 = inlined_call_operand.vmem [shape: f32[512,128], index: 3, kind: output, shape index: {}, may-alias: {0,3}]  }
   0x1   :  { %v14_v0 = vld [vmem:[%s896_s0] sm:$0xff]  ;;  %v15_v4 = vld [vmem:[%s896_s0 + $0x8] sm:$0xff]  ;;  %v16_v5 = vld [vmem:[%s896_s0 + $0x10] sm:$0xff] }
   0x2   :  { %v380_v1 = vld [vmem:[%s897_s1] ss:$0 sm:$0xff]  ;;  %v17_v6 = vld [vmem:[%s896_s0 + $0x18] sm:$0xff]  ;;  %v19_v11 = vld [vmem:[%s896_s0 + $0x28] sm:$0xff] }
   0x3   :  { %v385_v2 = vld [vmem:[%s898_s2] ss:$0 sm:$0xff]  ;;  %v85_v3 = vmul.f32 %v380_v1, %v14_v0  ;;  %v86_v7 = vmul.f32 %v380_v1, %v15_v4  ;;  %v87_v8 = vmul.f32 %v380_v1, %v16_v5  ;;  %v88_v9 = vmul.f32 %v380_v1, %v17_v6  ;;  %v20_v12 = vld [vmem:[%s896_s0 + $0x30] sm:$0xff]  ;;  %v21_v17 = vld [vmem:[%s896_s0 + $0x38] sm:$0xff] }
   0x4   :  { %v18_v10 = vld [vmem:[%s896_s0 + $0x20] sm:$0xff]  ;;  %v90_v15 = vmul.f32 %v380_v1, %v19_v11  ;;  %v91_v16 = vmul.f32 %v380_v1, %v20_v12  ;;  %v92_v21 = vmul.f32 %v380_v1, %v21_v17  ;;  %v23_v27 = vld [vmem:[%s896_s0 + $0x48] sm:$0xff]  ;;  %v24_v28 = vld [vmem:[%s896_s0 + $0x50] sm:$0xff] }
   0x5   :  { %v156_v13 = vadd.f32 %v385_v2, %v85_v3  ;;  %v89_v14 = vmul.f32 %v380_v1, %v18_v10  ;;  %v157_v18 = vadd.f32 %v385_v2, %v86_v7  ;;  %v158_v19 = vadd.f32 %v385_v2, %v87_v8  ;;  %v22_v22 = vld [vmem:[%s896_s0 + $0x40] sm:$0xff]  ;;  %v25_v29 = vld [vmem:[%s896_s0 + $0x58] sm:$0xff]  ;;  %v27_v35 = vld [vmem:[%s896_s0 + $0x68] sm:$0xff] }
   0x6   :  { %v159_v20 = vadd.f32 %v385_v2, %v88_v9  ;;  %v161_v25 = vadd.f32 %v385_v2, %v90_v15  ;;  %v162_v26 = vadd.f32 %v385_v2, %v91_v16  ;;  %v163_v33 = vadd.f32 %v385_v2, %v92_v21  ;;  %v26_v34 = vld [vmem:[%s896_s0 + $0x60] sm:$0xff]  ;;  %v28_v36 = vld [vmem:[%s896_s0 + $0x70] sm:$0xff] }
   0x7   :  { %v220_v23 = vmax.f32 %v156_v13, 0.0  ;;  %v160_v24 = vadd.f32 %v385_v2, %v89_v14  ;;  %v221_v30 = vmax.f32 %v157_v18, 0.0  ;;  %v222_v31 = vmax.f32 %v158_v19, 0.0 }
   0x8   :  { %v223_v32 = vmax.f32 %v159_v20, 0.0  ;;  %v225_v38 = vmax.f32 %v161_v25, 0.0  ;;  %v226_v39 = vmax.f32 %v162_v26, 0.0  ;;  %v93_v40 = vmul.f32 %v380_v1, %v22_v22 }
   0x9   :  { %284 = vst [vmem:[%s899_s3] sm:$0xff] %v220_v23  ;;  %v224_v37 = vmax.f32 %v160_v24, 0.0  ;;  %v227_v42 = vmax.f32 %v163_v33, 0.0  ;;  %v94_v43 = vmul.f32 %v380_v1, %v23_v27  ;;  %v95_v44 = vmul.f32 %v380_v1, %v24_v28 }
   0xa   :  { %v96_v45 = vmul.f32 %v380_v1, %v25_v29  ;;  %v164_v46 = vadd.f32 %v385_v2, %v93_v40  ;;  %v97_v47 = vmul.f32 %v380_v1, %v26_v34  ;;  %v98_v48 = vmul.f32 %v380_v1, %v27_v35 }
   0xb   :  { %v99_v49 = vmul.f32 %v380_v1, %v28_v36  ;;  %v165_v50 = vadd.f32 %v385_v2, %v94_v43  ;;  %v166_v51 = vadd.f32 %v385_v2, %v95_v44 }
   0xc   :  { %v167_v52 = vadd.f32 %v385_v2, %v96_v45  ;;  %v228_v55 = vmax.f32 %v164_v46, 0.0  ;;  %v168_v56 = vadd.f32 %v385_v2, %v97_v47  ;;  %v169_v57 = vadd.f32 %v385_v2, %v98_v48 }
   0xd   :  { %v170_v58 = vadd.f32 %v385_v2, %v99_v49  ;;  %v229_v62 = vmax.f32 %v165_v50, 0.0  ;;  %v230_v63 = vmax.f32 %v166_v51, 0.0 }
   0xe   :  { %v231_v0 = vmax.f32 %v167_v52, 0.0  ;;  %v232_v7 = vmax.f32 %v168_v56, 0.0  ;;  %v233_v8 = vmax.f32 %v169_v57, 0.0 }
   0xf   :  { %v234_v9 = vmax.f32 %v170_v58, 0.0 }
  0x10   :  { %v29_v41 = vld [vmem:[%s896_s0 + $0x78] sm:$0xff] }
  0x11   :  { %285 = vst [vmem:[%s899_s3 + $0x8] sm:$0xff] %v221_v30  ;;  %286 = vst [vmem:[%s899_s3 + $0x10] sm:$0xff] %v222_v31  ;;  %v100_v53 = vmul.f32 %v380_v1, %v29_v41 }
  0x12   :  { %287 = vst [vmem:[%s899_s3 + $0x18] sm:$0xff] %v223_v32  ;;  %288 = vst [vmem:[%s899_s3 + $0x20] sm:$0xff] %v224_v37 }
  0x13   :  { %289 = vst [vmem:[%s899_s3 + $0x28] sm:$0xff] %v225_v38  ;;  %290 = vst [vmem:[%s899_s3 + $0x30] sm:$0xff] %v226_v39  ;;  %v171_v3 = vadd.f32 %v385_v2, %v100_v53 }
  0x14   :  { %291 = vst [vmem:[%s899_s3 + $0x38] sm:$0xff] %v227_v42 }
  0x15   :  { %v235_v12 = vmax.f32 %v171_v3, 0.0 }
  0x1b   :  { %v30_v54 = vld [vmem:[%s896_s0 + $0x80] sm:$0xff]  ;;  %v31_v59 = vld [vmem:[%s896_s0 + $0x88] sm:$0xff]  ;;  %v32_v60 = vld [vmem:[%s896_s0 + $0x90] sm:$0xff] }
  0x1c   :  { %v33_v61 = vld [vmem:[%s896_s0 + $0x98] sm:$0xff]  ;;  %v34_v4 = vld [vmem:[%s896_s0 + $0xa0] sm:$0xff]  ;;  %v35_v5 = vld [vmem:[%s896_s0 + $0xa8] sm:$0xff]  ;;  %v101_v10 = vmul.f32 %v380_v1, %v30_v54  ;;  %v102_v13 = vmul.f32 %v380_v1, %v31_v59  ;;  %v103_v14 = vmul.f32 %v380_v1, %v32_v60 }
  0x1d   :  { %v36_v6 = vld [vmem:[%s896_s0 + $0xb0] sm:$0xff]  ;;  %v104_v15 = vmul.f32 %v380_v1, %v33_v61  ;;  %v105_v17 = vmul.f32 %v380_v1, %v34_v4  ;;  %v106_v18 = vmul.f32 %v380_v1, %v35_v5 }
  0x1e   :  { %292 = vst [vmem:[%s899_s3 + $0x40] sm:$0xff] %v228_v55  ;;  %v172_v16 = vadd.f32 %v385_v2, %v101_v10  ;;  %v107_v19 = vmul.f32 %v380_v1, %v36_v6  ;;  %v173_v20 = vadd.f32 %v385_v2, %v102_v13  ;;  %v174_v21 = vadd.f32 %v385_v2, %v103_v14 }
  0x1f   :  { %v175_v22 = vadd.f32 %v385_v2, %v104_v15  ;;  %v176_v26 = vadd.f32 %v385_v2, %v105_v17  ;;  %v177_v27 = vadd.f32 %v385_v2, %v106_v18 }
  0x20   :  { %v236_v25 = vmax.f32 %v172_v16, 0.0  ;;  %v178_v28 = vadd.f32 %v385_v2, %v107_v19  ;;  %v237_v32 = vmax.f32 %v173_v20, 0.0  ;;  %v238_v33 = vmax.f32 %v174_v21, 0.0 }
  0x21   :  { %v239_v34 = vmax.f32 %v175_v22, 0.0  ;;  %v240_v39 = vmax.f32 %v176_v26, 0.0  ;;  %v241_v40 = vmax.f32 %v177_v27, 0.0 }
  0x22   :  { %v242_v41 = vmax.f32 %v178_v28, 0.0 }
  0x25   :  { %v37_v11 = vld [vmem:[%s896_s0 + $0xb8] sm:$0xff] }
  0x26   :  { %293 = vst [vmem:[%s899_s3 + $0x48] sm:$0xff] %v229_v62  ;;  %294 = vst [vmem:[%s899_s3 + $0x50] sm:$0xff] %v230_v63  ;;  %v108_v23 = vmul.f32 %v380_v1, %v37_v11 }
  0x27   :  { %295 = vst [vmem:[%s899_s3 + $0x58] sm:$0xff] %v231_v0  ;;  %296 = vst [vmem:[%s899_s3 + $0x60] sm:$0xff] %v232_v7 }
  0x28   :  { %297 = vst [vmem:[%s899_s3 + $0x68] sm:$0xff] %v233_v8  ;;  %298 = vst [vmem:[%s899_s3 + $0x70] sm:$0xff] %v234_v9  ;;  %v179_v35 = vadd.f32 %v385_v2, %v108_v23 }
  0x29   :  { %299 = vst [vmem:[%s899_s3 + $0x78] sm:$0xff] %v235_v12 }
  0x2a   :  { %v243_v44 = vmax.f32 %v179_v35, 0.0 }
  0x30   :  { %v38_v24 = vld [vmem:[%s896_s0 + $0xc0] sm:$0xff]  ;;  %v39_v29 = vld [vmem:[%s896_s0 + $0xc8] sm:$0xff]  ;;  %v40_v30 = vld [vmem:[%s896_s0 + $0xd0] sm:$0xff] }
  0x31   :  { %v41_v31 = vld [vmem:[%s896_s0 + $0xd8] sm:$0xff]  ;;  %v42_v36 = vld [vmem:[%s896_s0 + $0xe0] sm:$0xff]  ;;  %v43_v37 = vld [vmem:[%s896_s0 + $0xe8] sm:$0xff]  ;;  %v109_v42 = vmul.f32 %v380_v1, %v38_v24  ;;  %v110_v45 = vmul.f32 %v380_v1, %v39_v29  ;;  %v111_v46 = vmul.f32 %v380_v1, %v40_v30 }
  0x32   :  { %v44_v38 = vld [vmem:[%s896_s0 + $0xf0] sm:$0xff]  ;;  %v112_v47 = vmul.f32 %v380_v1, %v41_v31  ;;  %v113_v49 = vmul.f32 %v380_v1, %v42_v36  ;;  %v114_v50 = vmul.f32 %v380_v1, %v43_v37 }
  0x33   :  { %300 = vst [vmem:[%s899_s3 + $0x80] sm:$0xff] %v236_v25  ;;  %v180_v48 = vadd.f32 %v385_v2, %v109_v42  ;;  %v115_v51 = vmul.f32 %v380_v1, %v44_v38  ;;  %v181_v52 = vadd.f32 %v385_v2, %v110_v45  ;;  %v182_v53 = vadd.f32 %v385_v2, %v111_v46 }
  0x34   :  { %v183_v54 = vadd.f32 %v385_v2, %v112_v47  ;;  %v184_v58 = vadd.f32 %v385_v2, %v113_v49  ;;  %v185_v59 = vadd.f32 %v385_v2, %v114_v50 }
  0x35   :  { %v244_v57 = vmax.f32 %v180_v48, 0.0  ;;  %v186_v60 = vadd.f32 %v385_v2, %v115_v51  ;;  %v245_v0 = vmax.f32 %v181_v52, 0.0  ;;  %v246_v3 = vmax.f32 %v182_v53, 0.0 }
  0x36   :  { %v247_v4 = vmax.f32 %v183_v54, 0.0  ;;  %v248_v9 = vmax.f32 %v184_v58, 0.0  ;;  %v249_v10 = vmax.f32 %v185_v59, 0.0 }
  0x37   :  { %v250_v11 = vmax.f32 %v186_v60, 0.0 }
  0x3a   :  { %v45_v43 = vld [vmem:[%s896_s0 + $0xf8] sm:$0xff] }
  0x3b   :  { %301 = vst [vmem:[%s899_s3 + $0x88] sm:$0xff] %v237_v32  ;;  %302 = vst [vmem:[%s899_s3 + $0x90] sm:$0xff] %v238_v33  ;;  %v116_v55 = vmul.f32 %v380_v1, %v45_v43 }
  0x3c   :  { %303 = vst [vmem:[%s899_s3 + $0x98] sm:$0xff] %v239_v34  ;;  %304 = vst [vmem:[%s899_s3 + $0xa0] sm:$0xff] %v240_v39 }
  0x3d   :  { %305 = vst [vmem:[%s899_s3 + $0xa8] sm:$0xff] %v241_v40  ;;  %306 = vst [vmem:[%s899_s3 + $0xb0] sm:$0xff] %v242_v41  ;;  %v187_v5 = vadd.f32 %v385_v2, %v116_v55 }
  0x3e   :  { %307 = vst [vmem:[%s899_s3 + $0xb8] sm:$0xff] %v243_v44 }
  0x3f   :  { %v251_v14 = vmax.f32 %v187_v5, 0.0 }
  0x45   :  { %v46_v56 = vld [vmem:[%s896_s0 + $0x100] sm:$0xff]  ;;  %v47_v61 = vld [vmem:[%s896_s0 + $0x108] sm:$0xff]  ;;  %v48_v62 = vld [vmem:[%s896_s0 + $0x110] sm:$0xff] }
  0x46   :  { %v49_v63 = vld [vmem:[%s896_s0 + $0x118] sm:$0xff]  ;;  %v50_v6 = vld [vmem:[%s896_s0 + $0x120] sm:$0xff]  ;;  %v51_v7 = vld [vmem:[%s896_s0 + $0x128] sm:$0xff]  ;;  %v117_v12 = vmul.f32 %v380_v1, %v46_v56  ;;  %v118_v15 = vmul.f32 %v380_v1, %v47_v61  ;;  %v119_v16 = vmul.f32 %v380_v1, %v48_v62 }
  0x47   :  { %v52_v8 = vld [vmem:[%s896_s0 + $0x130] sm:$0xff]  ;;  %v120_v17 = vmul.f32 %v380_v1, %v49_v63  ;;  %v121_v19 = vmul.f32 %v380_v1, %v50_v6  ;;  %v122_v20 = vmul.f32 %v380_v1, %v51_v7 }
  0x48   :  { %308 = vst [vmem:[%s899_s3 + $0xc0] sm:$0xff] %v244_v57  ;;  %v188_v18 = vadd.f32 %v385_v2, %v117_v12  ;;  %v123_v21 = vmul.f32 %v380_v1, %v52_v8  ;;  %v189_v22 = vadd.f32 %v385_v2, %v118_v15  ;;  %v190_v23 = vadd.f32 %v385_v2, %v119_v16 }
  0x49   :  { %v191_v24 = vadd.f32 %v385_v2, %v120_v17  ;;  %v192_v28 = vadd.f32 %v385_v2, %v121_v19  ;;  %v193_v29 = vadd.f32 %v385_v2, %v122_v20 }
  0x4a   :  { %v252_v27 = vmax.f32 %v188_v18, 0.0  ;;  %v194_v30 = vadd.f32 %v385_v2, %v123_v21  ;;  %v253_v34 = vmax.f32 %v189_v22, 0.0  ;;  %v254_v35 = vmax.f32 %v190_v23, 0.0 }
  0x4b   :  { %v255_v36 = vmax.f32 %v191_v24, 0.0  ;;  %v256_v41 = vmax.f32 %v192_v28, 0.0  ;;  %v257_v42 = vmax.f32 %v193_v29, 0.0 }
  0x4c   :  { %v258_v43 = vmax.f32 %v194_v30, 0.0 }
  0x4f   :  { %v53_v13 = vld [vmem:[%s896_s0 + $0x138] sm:$0xff] }
  0x50   :  { %309 = vst [vmem:[%s899_s3 + $0xc8] sm:$0xff] %v245_v0  ;;  %310 = vst [vmem:[%s899_s3 + $0xd0] sm:$0xff] %v246_v3  ;;  %v124_v25 = vmul.f32 %v380_v1, %v53_v13 }
  0x51   :  { %311 = vst [vmem:[%s899_s3 + $0xd8] sm:$0xff] %v247_v4  ;;  %312 = vst [vmem:[%s899_s3 + $0xe0] sm:$0xff] %v248_v9 }
  0x52   :  { %313 = vst [vmem:[%s899_s3 + $0xe8] sm:$0xff] %v249_v10  ;;  %314 = vst [vmem:[%s899_s3 + $0xf0] sm:$0xff] %v250_v11  ;;  %v195_v37 = vadd.f32 %v385_v2, %v124_v25 }
  0x53   :  { %315 = vst [vmem:[%s899_s3 + $0xf8] sm:$0xff] %v251_v14 }
  0x54   :  { %v259_v46 = vmax.f32 %v195_v37, 0.0 }
  0x5a   :  { %v54_v26 = vld [vmem:[%s896_s0 + $0x140] sm:$0xff]  ;;  %v55_v31 = vld [vmem:[%s896_s0 + $0x148] sm:$0xff]  ;;  %v56_v32 = vld [vmem:[%s896_s0 + $0x150] sm:$0xff] }
  0x5b   :  { %v57_v33 = vld [vmem:[%s896_s0 + $0x158] sm:$0xff]  ;;  %v58_v38 = vld [vmem:[%s896_s0 + $0x160] sm:$0xff]  ;;  %v59_v39 = vld [vmem:[%s896_s0 + $0x168] sm:$0xff]  ;;  %v125_v44 = vmul.f32 %v380_v1, %v54_v26  ;;  %v126_v47 = vmul.f32 %v380_v1, %v55_v31  ;;  %v127_v48 = vmul.f32 %v380_v1, %v56_v32 }
  0x5c   :  { %v60_v40 = vld [vmem:[%s896_s0 + $0x170] sm:$0xff]  ;;  %v128_v49 = vmul.f32 %v380_v1, %v57_v33  ;;  %v129_v51 = vmul.f32 %v380_v1, %v58_v38  ;;  %v130_v52 = vmul.f32 %v380_v1, %v59_v39 }
  0x5d   :  { %316 = vst [vmem:[%s899_s3 + $0x100] sm:$0xff] %v252_v27  ;;  %v196_v50 = vadd.f32 %v385_v2, %v125_v44  ;;  %v131_v53 = vmul.f32 %v380_v1, %v60_v40  ;;  %v197_v54 = vadd.f32 %v385_v2, %v126_v47  ;;  %v198_v55 = vadd.f32 %v385_v2, %v127_v48 }
  0x5e   :  { %v199_v56 = vadd.f32 %v385_v2, %v128_v49  ;;  %v200_v60 = vadd.f32 %v385_v2, %v129_v51  ;;  %v201_v61 = vadd.f32 %v385_v2, %v130_v52 }
  0x5f   :  { %v260_v59 = vmax.f32 %v196_v50, 0.0  ;;  %v202_v62 = vadd.f32 %v385_v2, %v131_v53  ;;  %v261_v4 = vmax.f32 %v197_v54, 0.0  ;;  %v262_v5 = vmax.f32 %v198_v55, 0.0 }
  0x60   :  { %v263_v6 = vmax.f32 %v199_v56, 0.0  ;;  %v264_v11 = vmax.f32 %v200_v60, 0.0  ;;  %v265_v12 = vmax.f32 %v201_v61, 0.0 }
  0x61   :  { %v266_v13 = vmax.f32 %v202_v62, 0.0 }
  0x64   :  { %v61_v45 = vld [vmem:[%s896_s0 + $0x178] sm:$0xff] }
  0x65   :  { %317 = vst [vmem:[%s899_s3 + $0x108] sm:$0xff] %v253_v34  ;;  %318 = vst [vmem:[%s899_s3 + $0x110] sm:$0xff] %v254_v35  ;;  %v132_v57 = vmul.f32 %v380_v1, %v61_v45 }
  0x66   :  { %319 = vst [vmem:[%s899_s3 + $0x118] sm:$0xff] %v255_v36  ;;  %320 = vst [vmem:[%s899_s3 + $0x120] sm:$0xff] %v256_v41 }
  0x67   :  { %321 = vst [vmem:[%s899_s3 + $0x128] sm:$0xff] %v257_v42  ;;  %322 = vst [vmem:[%s899_s3 + $0x130] sm:$0xff] %v258_v43  ;;  %v203_v7 = vadd.f32 %v385_v2, %v132_v57 }
  0x68   :  { %323 = vst [vmem:[%s899_s3 + $0x138] sm:$0xff] %v259_v46 }
  0x69   :  { %v267_v16 = vmax.f32 %v203_v7, 0.0 }
  0x6f   :  { %v62_v58 = vld [vmem:[%s896_s0 + $0x180] sm:$0xff]  ;;  %v63_v63 = vld [vmem:[%s896_s0 + $0x188] sm:$0xff]  ;;  %v64_v0 = vld [vmem:[%s896_s0 + $0x190] sm:$0xff] }
  0x70   :  { %v65_v3 = vld [vmem:[%s896_s0 + $0x198] sm:$0xff]  ;;  %v66_v8 = vld [vmem:[%s896_s0 + $0x1a0] sm:$0xff]  ;;  %v67_v9 = vld [vmem:[%s896_s0 + $0x1a8] sm:$0xff]  ;;  %v133_v14 = vmul.f32 %v380_v1, %v62_v58  ;;  %v134_v17 = vmul.f32 %v380_v1, %v63_v63  ;;  %v135_v18 = vmul.f32 %v380_v1, %v64_v0 }
  0x71   :  { %v68_v10 = vld [vmem:[%s896_s0 + $0x1b0] sm:$0xff]  ;;  %v136_v19 = vmul.f32 %v380_v1, %v65_v3  ;;  %v137_v21 = vmul.f32 %v380_v1, %v66_v8  ;;  %v138_v22 = vmul.f32 %v380_v1, %v67_v9 }
  0x72   :  { %324 = vst [vmem:[%s899_s3 + $0x140] sm:$0xff] %v260_v59  ;;  %v204_v20 = vadd.f32 %v385_v2, %v133_v14  ;;  %v139_v23 = vmul.f32 %v380_v1, %v68_v10  ;;  %v205_v24 = vadd.f32 %v385_v2, %v134_v17  ;;  %v206_v25 = vadd.f32 %v385_v2, %v135_v18 }
  0x73   :  { %v207_v26 = vadd.f32 %v385_v2, %v136_v19  ;;  %v208_v30 = vadd.f32 %v385_v2, %v137_v21  ;;  %v209_v31 = vadd.f32 %v385_v2, %v138_v22 }
  0x74   :  { %v268_v29 = vmax.f32 %v204_v20, 0.0  ;;  %v210_v32 = vadd.f32 %v385_v2, %v139_v23  ;;  %v269_v36 = vmax.f32 %v205_v24, 0.0  ;;  %v270_v37 = vmax.f32 %v206_v25, 0.0 }
  0x75   :  { %v271_v38 = vmax.f32 %v207_v26, 0.0  ;;  %v272_v43 = vmax.f32 %v208_v30, 0.0  ;;  %v273_v44 = vmax.f32 %v209_v31, 0.0 }
  0x76   :  { %v274_v45 = vmax.f32 %v210_v32, 0.0 }
  0x79   :  { %v69_v15 = vld [vmem:[%s896_s0 + $0x1b8] sm:$0xff] }
  0x7a   :  { %325 = vst [vmem:[%s899_s3 + $0x148] sm:$0xff] %v261_v4  ;;  %326 = vst [vmem:[%s899_s3 + $0x150] sm:$0xff] %v262_v5  ;;  %v140_v27 = vmul.f32 %v380_v1, %v69_v15 }
  0x7b   :  { %327 = vst [vmem:[%s899_s3 + $0x158] sm:$0xff] %v263_v6  ;;  %328 = vst [vmem:[%s899_s3 + $0x160] sm:$0xff] %v264_v11 }
  0x7c   :  { %329 = vst [vmem:[%s899_s3 + $0x168] sm:$0xff] %v265_v12  ;;  %330 = vst [vmem:[%s899_s3 + $0x170] sm:$0xff] %v266_v13  ;;  %v211_v39 = vadd.f32 %v385_v2, %v140_v27 }
  0x7d   :  { %331 = vst [vmem:[%s899_s3 + $0x178] sm:$0xff] %v267_v16 }
  0x7e   :  { %v275_v48 = vmax.f32 %v211_v39, 0.0 }
  0x84   :  { %v70_v28 = vld [vmem:[%s896_s0 + $0x1c0] sm:$0xff]  ;;  %v71_v33 = vld [vmem:[%s896_s0 + $0x1c8] sm:$0xff]  ;;  %v72_v34 = vld [vmem:[%s896_s0 + $0x1d0] sm:$0xff] }
  0x85   :  { %v73_v35 = vld [vmem:[%s896_s0 + $0x1d8] sm:$0xff]  ;;  %v74_v40 = vld [vmem:[%s896_s0 + $0x1e0] sm:$0xff]  ;;  %v75_v41 = vld [vmem:[%s896_s0 + $0x1e8] sm:$0xff]  ;;  %v141_v46 = vmul.f32 %v380_v1, %v70_v28  ;;  %v142_v49 = vmul.f32 %v380_v1, %v71_v33  ;;  %v143_v50 = vmul.f32 %v380_v1, %v72_v34 }
  0x86   :  { %v76_v42 = vld [vmem:[%s896_s0 + $0x1f0] sm:$0xff]  ;;  %v144_v51 = vmul.f32 %v380_v1, %v73_v35  ;;  %v145_v53 = vmul.f32 %v380_v1, %v74_v40  ;;  %v146_v54 = vmul.f32 %v380_v1, %v75_v41 }
  0x87   :  { %332 = vst [vmem:[%s899_s3 + $0x180] sm:$0xff] %v268_v29  ;;  %v212_v52 = vadd.f32 %v385_v2, %v141_v46  ;;  %v147_v55 = vmul.f32 %v380_v1, %v76_v42  ;;  %v213_v56 = vadd.f32 %v385_v2, %v142_v49  ;;  %v214_v57 = vadd.f32 %v385_v2, %v143_v50 }
  0x88   :  { %v215_v58 = vadd.f32 %v385_v2, %v144_v51  ;;  %v216_v61 = vadd.f32 %v385_v2, %v145_v53  ;;  %v217_v62 = vadd.f32 %v385_v2, %v146_v54 }
  0x89   :  { %v276_v60 = vmax.f32 %v212_v52, 0.0  ;;  %v218_v63 = vadd.f32 %v385_v2, %v147_v55  ;;  %v277_v0 = vmax.f32 %v213_v56, 0.0  ;;  %v278_v3 = vmax.f32 %v214_v57, 0.0 }
  0x8a   :  { %v279_v4 = vmax.f32 %v215_v58, 0.0  ;;  %v280_v6 = vmax.f32 %v216_v61, 0.0  ;;  %v281_v7 = vmax.f32 %v217_v62, 0.0 }
  0x8b   :  { %v282_v8 = vmax.f32 %v218_v63, 0.0 }
  0x8e   :  { %v77_v47 = vld [vmem:[%s896_s0 + $0x1f8] sm:$0xff] }
  0x8f   :  { %333 = vst [vmem:[%s899_s3 + $0x188] sm:$0xff] %v269_v36  ;;  %334 = vst [vmem:[%s899_s3 + $0x190] sm:$0xff] %v270_v37  ;;  %v148_v59 = vmul.f32 %v380_v1, %v77_v47 }
  0x90   :  { %335 = vst [vmem:[%s899_s3 + $0x198] sm:$0xff] %v271_v38  ;;  %336 = vst [vmem:[%s899_s3 + $0x1a0] sm:$0xff] %v272_v43 }
  0x91   :  { %337 = vst [vmem:[%s899_s3 + $0x1a8] sm:$0xff] %v273_v44  ;;  %338 = vst [vmem:[%s899_s3 + $0x1b0] sm:$0xff] %v274_v45  ;;  %v219_v5 = vadd.f32 %v385_v2, %v148_v59 }
  0x92   :  { %339 = vst [vmem:[%s899_s3 + $0x1b8] sm:$0xff] %v275_v48  ;;  %340 = vst [vmem:[%s899_s3 + $0x1c0] sm:$0xff] %v276_v60 }
  0x93   :  { %341 = vst [vmem:[%s899_s3 + $0x1c8] sm:$0xff] %v277_v0  ;;  %342 = vst [vmem:[%s899_s3 + $0x1d0] sm:$0xff] %v278_v3  ;;  %v283_v1 = vmax.f32 %v219_v5, 0.0 }
  0x94   :  { %343 = vst [vmem:[%s899_s3 + $0x1d8] sm:$0xff] %v279_v4  ;;  %344 = vst [vmem:[%s899_s3 + $0x1e0] sm:$0xff] %v280_v6 }
  0x95   :  { %345 = vst [vmem:[%s899_s3 + $0x1e8] sm:$0xff] %v281_v7  ;;  %346 = vst [vmem:[%s899_s3 + $0x1f0] sm:$0xff] %v282_v8 }
  0x96   :  { %347 = vst [vmem:[%s899_s3 + $0x1f8] sm:$0xff] %v283_v1 }

// kernel: fc_forward.2
= control target key start
LH: loop header
LB: loop body
LE: loop exit
PB: predicated region body
PF: predicated region fallthrough
CT: control target
= control target key end

     0   :  { %s1944_s30 = smov 0   ;;  %s2223_s0 = inlined_call_operand.vmem [shape: bf16[512,128], index: 0, kind: input, shape index: {}]   ;;  %s2224_s1 = inlined_call_operand.vmem [shape: bf16[128,128], index: 1, kind: input, shape index: {}]   ;;  %s2225_s2 = inlined_call_operand.vmem [shape: f32[1,128], index: 2, kind: input, shape index: {}]   ;;  %s2226_s3 = inlined_call_operand.vmem [shape: bf16[128,128], index: 3, kind: input, shape index: {}]   ;;  %s2227_s4 = inlined_call_operand.vmem [shape: f32[1,128], index: 4, kind: input, shape index: {}]   ;;  %s2228_s5 = inlined_call_operand.vmem [shape: bf16[128,128], index: 5, kind: input, shape index: {}]   ;;  %s2229_s6 = inlined_call_operand.vmem [shape: f32[1,128], index: 6, kind: input, shape index: {}]   ;;  %s2230_s7 = inlined_call_operand.vmem [shape: f32[512,128], index: 7, kind: output, shape index: {0}]   ;;  %s2231_s8 = inlined_call_operand.vmem [shape: f32[2,1,128], index: 8, kind: output, shape index: {1}]   ;;  %s2232_s9 = inlined_call_operand.vmem [shape: f32[2,1,128], index: 9, kind: output, shape index: {2}]  }
   0x1 LB: > { %s1950_s10 = sadd.s32 4294967295, %s1892_s30   ;;  %p1556_p0 = scmp.ge.s32.totalorder %s1892_s30, 1  ;;  %s1892_s30 = sphi %s1944_s30, %s20_s30  }
   0x2   : > { %p293_p1 = scmp.lt.s32.totalorder %s1892_s30, 3 }
   0x4   : > { %p294_p2 = pnand %p1556_p0, %p293_p1 }
   0x5   : > { %v1846_v0 = vld [vmem:[%s2224_s1] sm:$0xff] (!%p294_p2)   ;;  %s1557_s13 = sshll.u32 (!%p294_p2), %s1950_s10, 5  ;;  %v1847_v1 = vld [vmem:[%s2224_s1 + $0x8] sm:$0xff] (!%p294_p2)   ;;  %v1848_v2 = vld [vmem:[%s2224_s1 + $0x10] sm:$0xff] (!%p294_p2)   ;;  %p347_p4 = scmp.lt.s32.totalorder (!%p294_p2), %s1950_s10, 1 }
   0x6   : > { %297 = sbr.rel (%p294_p2) target bundleno = 778 (0x30a), region = 48  ;;  %p336_p3 = scmp.lt.s32.totalorder (!%p294_p2), %s1557_s13, 63  ;;  %1678 = vmatprep.subr.bf16.mxu0 (!%p294_p2), %v1846_v0  ;;  %1822 = vmatprep.subr.bf16.mxu1 (!%p294_p2), %v1846_v0  ;;  %v1849_v3 = vld [vmem:[%s2224_s1 + $0x18] sm:$0xff] (!%p294_p2)   ;;  %v1850_v5 = vld [vmem:[%s2224_s1 + $0x20] sm:$0xff] (!%p294_p2)   ;;  %v1851_v6 = vld [vmem:[%s2224_s1 + $0x28] sm:$0xff] (!%p294_p2)  }
   0x7   : > { %1679 = vmatpush3.bf16.msra.mxu0 (!%p294_p2), %v1846_v0  ;;  %1830 = vmatpush3.bf16.msra.mxu1 (!%p294_p2), %v1846_v0  ;;  %v1852_v8 = vld [vmem:[%s2224_s1 + $0x30] sm:$0xff] (!%p294_p2)   ;;  %v1853_v9 = vld [vmem:[%s2224_s1 + $0x38] sm:$0xff] (!%p294_p2)   ;;  %v1870_v12 = vld [vmem:[%s2226_s3] sm:$0xff] (!%p294_p2)  }
   0x8   : > { %1680 = vmatprep.subr.bf16.mxu0 (!%p294_p2), %v1847_v1  ;;  %1823 = vmatprep.subr.bf16.mxu1 (!%p294_p2), %v1847_v1  ;;  %v1871_v15 = vld [vmem:[%s2226_s3 + $0x8] sm:$0xff] (!%p294_p2)   ;;  %v1872_v16 = vld [vmem:[%s2226_s3 + $0x10] sm:$0xff] (!%p294_p2)   ;;  %v1873_v21 = vld [vmem:[%s2226_s3 + $0x18] sm:$0xff] (!%p294_p2)  }
   0x9   : > { %v1874_v22 = vld [vmem:[%s2226_s3 + $0x20] sm:$0xff] (!%p294_p2)   ;;  %v1875_v27 = vld [vmem:[%s2226_s3 + $0x28] sm:$0xff] (!%p294_p2)   ;;  %v1876_v30 = vld [vmem:[%s2226_s3 + $0x30] sm:$0xff] (!%p294_p2)  }
   0xa   : > { %v1877_v31 = vld [vmem:[%s2226_s3 + $0x38] sm:$0xff] (!%p294_p2)   ;;  %v1878_v32 = vld [vmem:[%s2228_s5] sm:$0xff] (!%p294_p2)   ;;  %v1879_v33 = vld [vmem:[%s2228_s5 + $0x8] sm:$0xff] (!%p294_p2)  }
   0xb   : > { %1681 = vmatpush3.bf16.msra.mxu0 (!%p294_p2), %v1847_v1  ;;  %1831 = vmatpush3.bf16.msra.mxu1 (!%p294_p2), %v1847_v1  ;;  %v1880_v34 = vld [vmem:[%s2228_s5 + $0x10] sm:$0xff] (!%p294_p2)   ;;  %v1881_v35 = vld [vmem:[%s2228_s5 + $0x18] sm:$0xff] (!%p294_p2)   ;;  %v1882_v36 = vld [vmem:[%s2228_s5 + $0x20] sm:$0xff] (!%p294_p2)  }
   0xc   : > { %1682 = vmatprep.subr.bf16.mxu0 (!%p294_p2), %v1848_v2  ;;  %1824 = vmatprep.subr.bf16.mxu1 (!%p294_p2), %v1848_v2  ;;  %v1883_v37 = vld [vmem:[%s2228_s5 + $0x28] sm:$0xff] (!%p294_p2)   ;;  %v2048_v38 = vld [vmem:[%s2225_s2] ss:$0 sm:$0xff] (!%p294_p2) }
   0xd   : > { %s2234_s13 = smov (!%p336_p3, %s1557_s13), 63  ;;  %s2236_s10 = smov (!%p347_p4, %s1950_s10), 1 }
   0xe   : > { %s1558_s18 = sshll.u32 %s2234_s13, 2  ;;  %s1560_s16 = sshll.u32 %s2234_s13, 3 }
   0xf   : > { %s1970_s21 = scalar_lea.vmem %s2223_s0, %s1558_s18  ;;  %1683 = vmatpush3.bf16.msra.mxu0 %v1848_v2  ;;  %1832 = vmatpush3.bf16.msra.mxu1 %v1848_v2  ;;  %s2147_s19 = scalar_lea.vmem %s2230_s7, %s1560_s16 }
  0x10   : > { %v1854_v4 = vld [vmem:[%s1970_s21] sm:$0xff]   ;;  %1684 = vmatprep.subr.bf16.mxu0 %v1849_v3  ;;  %1825 = vmatprep.subr.bf16.mxu1 %v1849_v3  ;;  %v1855_v10 = vld [vmem:[%s1970_s21 + $0x8] sm:$0xff]   ;;  %v1856_v13 = vld [vmem:[%s1970_s21 + $0x10] sm:$0xff]   ;;  %s349_s22 = scalar_lea.vmem %s2231_s8, %s2236_s10  ;;  %s352_s25 = scalar_lea.vmem %s2232_s9, %s2236_s10 }
  0x11   : > { %1694 = vmatprep.mubr.bf16.mxu0 %v1854_v4  ;;  %v1862_v7 = vld [vmem:[%s1970_s21 + $0x40] sm:$0xff]   ;;  %v1863_v11 = vld [vmem:[%s1970_s21 + $0x48] sm:$0xff]   ;;  %v1864_v14 = vld [vmem:[%s1970_s21 + $0x50] sm:$0xff]  }
  0x12   : > { %1710 = vmatprep.mubr.bf16.mxu1 %v1862_v7  ;;  %v1857_v17 = vld [vmem:[%s1970_s21 + $0x18] sm:$0xff]   ;;  %v1858_v19 = vld [vmem:[%s1970_s21 + $0x20] sm:$0xff]   ;;  %v1859_v23 = vld [vmem:[%s1970_s21 + $0x28] sm:$0xff]  }
  0x13   : > { %1685 = vmatpush3.bf16.msra.mxu0 %v1849_v3  ;;  %1833 = vmatpush3.bf16.msra.mxu1 %v1849_v3  ;;  %v1865_v18 = vld [vmem:[%s1970_s21 + $0x58] sm:$0xff]   ;;  %v1866_v20 = vld [vmem:[%s1970_s21 + $0x60] sm:$0xff]   ;;  %v1867_v24 = vld [vmem:[%s1970_s21 + $0x68] sm:$0xff]  }
  0x14   : > { %1686 = vmatprep.subr.bf16.mxu0 %v1850_v5  ;;  %1826 = vmatprep.subr.bf16.mxu1 %v1850_v5  ;;  %v1860_v25 = vld [vmem:[%s1970_s21 + $0x30] sm:$0xff]   ;;  %v1861_v28 = vld [vmem:[%s1970_s21 + $0x38] sm:$0xff]  }
  0x15   : > { %v1868_v26 = vld [vmem:[%s1970_s21 + $0x70] sm:$0xff]   ;;  %v1869_v29 = vld [vmem:[%s1970_s21 + $0x78] sm:$0xff]  }
  0x17   : > { %1687 = vmatpush3.bf16.msra.mxu0 %v1850_v5  ;;  %1834 = vmatpush3.bf16.msra.mxu1 %v1850_v5 }
  0x18   : > { %1688 = vmatprep.subr.bf16.mxu0 %v1851_v6  ;;  %1827 = vmatprep.subr.bf16.mxu1 %v1851_v6 }
  0x1b   : > { %1689 = vmatpush3.bf16.msra.mxu0 %v1851_v6  ;;  %1835 = vmatpush3.bf16.msra.mxu1 %v1851_v6 }
  0x1c   : > { %1690 = vmatprep.subr.bf16.mxu0 %v1852_v8  ;;  %1828 = vmatprep.subr.bf16.mxu1 %v1852_v8 }
  0x1f   : > { %1691 = vmatpush3.bf16.msra.mxu0 %v1852_v8  ;;  %1836 = vmatpush3.bf16.msra.mxu1 %v1852_v8 }
  0x20   : > { %1692 = vmatprep.subr.bf16.mxu0 %v1853_v9  ;;  %1829 = vmatprep.subr.bf16.mxu1 %v1853_v9 }
  0x23   : > { %1693 = vmatpush3.bf16.msra.mxu0 %v1853_v9  ;;  %1837 = vmatpush3.bf16.msra.mxu1 %v1853_v9 }
  0x24   : > { %1726 = vmatprep.subr.bf16.mxu1 %v1870_v12  ;;  %1774 = vmatprep.subr.bf16.mxu0 %v1878_v32 }
  0x26   : > { %1695 = vmatmul.mubr.bf16.vlgmr.msra.gmra.mrb[0].mxu0 %v1855_v10  ;;  %1711 = vmatmul.mubr.bf16.vlgmr.msra.gmra.mrb[0].mxu1 %v1863_v11 }
  0x27   : > { %1698 = vmatprep.mubr.bf16.mxu0 %v1856_v13  ;;  %1714 = vmatprep.mubr.bf16.mxu1 %v1864_v14 }
  0x28   : > { %1727 = vmatpush3.bf16.msra.mxu1 %v1870_v12  ;;  %1775 = vmatpush3.bf16.msra.mxu0 %v1878_v32 }
  0x29   : > { %1728 = vmatprep.subr.bf16.mxu1 %v1871_v15  ;;  %1776 = vmatprep.subr.bf16.mxu0 %v1879_v33 }
  0x2c   : > { %1729 = vmatpush3.bf16.msra.mxu1 %v1871_v15  ;;  %1777 = vmatpush3.bf16.msra.mxu0 %v1879_v33 }
  0x2d   : > { %1730 = vmatprep.subr.bf16.mxu1 %v1872_v16  ;;  %1778 = vmatprep.subr.bf16.mxu0 %v1880_v34 }
  0x2e   : > { %1699 = vmatmul.mubr.bf16.gmra.mrb[4].mxu0 %v1857_v17  ;;  %1715 = vmatmul.mubr.bf16.gmra.mrb[4].mxu1 %v1865_v18 }
  0x2f   : > { %1702 = vmatprep.mubr.bf16.mxu0 %v1858_v19  ;;  %1718 = vmatprep.mubr.bf16.mxu1 %v1866_v20 }
  0x30   : > { %1731 = vmatpush3.bf16.msra.mxu1 %v1872_v16  ;;  %1779 = vmatpush3.bf16.msra.mxu0 %v1880_v34 }
  0x31   : > { %1732 = vmatprep.subr.bf16.mxu1 %v1873_v21  ;;  %1780 = vmatprep.subr.bf16.mxu0 %v1881_v35 }
  0x34   : > { %1733 = vmatpush3.bf16.msra.mxu1 %v1873_v21  ;;  %1781 = vmatpush3.bf16.msra.mxu0 %v1881_v35 }
  0x35   : > { %1734 = vmatprep.subr.bf16.mxu1 %v1874_v22  ;;  %1782 = vmatprep.subr.bf16.mxu0 %v1882_v36 }
  0x36   : > { %1703 = vmatmul.mubr.bf16.gmra.mrb[8].mxu0 %v1859_v23  ;;  %1719 = vmatmul.mubr.bf16.gmra.mrb[8].mxu1 %v1867_v24 }
  0x37   : > { %1706 = vmatprep.mubr.bf16.mxu0 %v1860_v25  ;;  %1722 = vmatprep.mubr.bf16.mxu1 %v1868_v26 }
  0x38   : > { %1735 = vmatpush3.bf16.msra.mxu1 %v1874_v22  ;;  %1783 = vmatpush3.bf16.msra.mxu0 %v1882_v36 }
  0x39   : > { %1736 = vmatprep.subr.bf16.mxu1 %v1875_v27  ;;  %1784 = vmatprep.subr.bf16.mxu0 %v1883_v37 }
  0x3c   : > { %1737 = vmatpush3.bf16.msra.mxu1 %v1875_v27  ;;  %1785 = vmatpush3.bf16.msra.mxu0 %v1883_v37 }
  0x3d   : > { %1738 = vmatprep.subr.bf16.mxu1 %v1876_v30 }
  0x3e   : > { %1707 = vmatmul.mubr.bf16.gmra.mrb[12].mxu0 %v1861_v28  ;;  %1723 = vmatmul.mubr.bf16.gmra.mrb[12].mxu1 %v1869_v29 }
  0x40   : > { %1739 = vmatpush3.bf16.msra.mxu1 %v1876_v30 }
  0x41   : > { %1740 = vmatprep.subr.bf16.mxu1 %v1877_v31 }
  0x44   : > { %1741 = vmatpush3.bf16.msra.mxu1 %v1877_v31 }
  0xf9   : > { %v1696_v39 = vpop.f32.mrb[0].mxu0  ;;  %v1712_v40 = vpop.f32.mrb[0].mxu1 }
  0xfa   : > { %v596_v41 = vadd.f32 %v1696_v39, %v2048_v38  ;;  %v587_v42 = vpop.f32.mrb[1].mxu0  ;;  %v660_v43 = vadd.f32 %v1712_v40, %v2048_v38  ;;  %v651_v44 = vpop.f32.mrb[1].mxu1 }
  0xfb   : > { %v588_v45 = vadd.f32 %v2048_v38, %v587_v42  ;;  %v1697_v46 = vpop.f32.mrb[2].mxu0  ;;  %v652_v47 = vadd.f32 %v2048_v38, %v651_v44  ;;  %v1713_v48 = vpop.f32.mrb[2].mxu1 }
  0xfc   : > { %v599_v49 = vadd.f32 %v1697_v46, %v2048_v38  ;;  %v590_v50 = vpop.f32.mrb[3].mxu0  ;;  %v732_v51 = vmax.f32 %v660_v43, 0.0  ;;  %v663_v52 = vadd.f32 %v1713_v48, %v2048_v38  ;;  %v654_v53 = vpop.f32.mrb[3].mxu1  ;;  %v716_v57 = vmax.f32 %v596_v41, 0.0 }
  0xfd   : > { %v591_v54 = vadd.f32 %v2048_v38, %v590_v50  ;;  %v730_v55 = vmax.f32 %v652_v47, 0.0  ;;  %v655_v56 = vadd.f32 %v2048_v38, %v654_v53  ;;  %v714_v60 = vmax.f32 %v588_v45, 0.0 }
  0xfe   : > { %v717_v58 = vmax.f32 %v599_v49, 0.0  ;;  %v733_v59 = vmax.f32 %v663_v52, 0.0 }
  0xff   : > { %v715_v61 = vmax.f32 %v591_v54, 0.0  ;;  %v731_v62 = vmax.f32 %v655_v56, 0.0 }
 0x100   : > { %v747_v63 = vpack.c.bf16 %v717_v58, %v716_v57  ;;  %v2058_v0 = vpack.c.bf16 %v733_v59, %v732_v51 }
 0x101   : > { %v746_v1 = vpack.c.bf16 %v715_v61, %v714_v60  ;;  %v1700_v2 = vpop.f32.mrb[4].mxu0  ;;  %v2060_v3 = vpack.c.bf16 %v731_v62, %v730_v55  ;;  %v1716_v4 = vpop.f32.mrb[4].mxu1 }
 0x102   : > { %v612_v5 = vadd.f32 %v1700_v2, %v2048_v38  ;;  %v603_v6 = vpop.f32.mrb[5].mxu0  ;;  %v676_v7 = vadd.f32 %v1716_v4, %v2048_v38  ;;  %v667_v8 = vpop.f32.mrb[5].mxu1 }
 0x103   : > { %v604_v9 = vadd.f32 %v2048_v38, %v603_v6  ;;  %v1701_v10 = vpop.f32.mrb[6].mxu0  ;;  %1742 = vmatprep.mubr.bf16.mxu1 %v746_v1  ;;  %v668_v11 = vadd.f32 %v2048_v38, %v667_v8  ;;  %v1717_v12 = vpop.f32.mrb[6].mxu1 }
 0x104   : > { %v615_v13 = vadd.f32 %v1701_v10, %v2048_v38  ;;  %v606_v14 = vpop.f32.mrb[7].mxu0  ;;  %1743 = vmatmul.mubr.bf16.vlgmr.msra.gmra.mrb[16].mxu1 %v747_v63  ;;  %v736_v15 = vmax.f32 %v676_v7, 0.0  ;;  %v679_v16 = vadd.f32 %v1717_v12, %v2048_v38  ;;  %v670_v17 = vpop.f32.mrb[7].mxu1  ;;  %v720_v21 = vmax.f32 %v612_v5, 0.0 }
 0x105   : > { %v607_v18 = vadd.f32 %v2048_v38, %v606_v14  ;;  %v734_v19 = vmax.f32 %v668_v11, 0.0  ;;  %v671_v20 = vadd.f32 %v2048_v38, %v670_v17  ;;  %v718_v24 = vmax.f32 %v604_v9, 0.0 }
 0x106   : > { %v721_v22 = vmax.f32 %v615_v13, 0.0  ;;  %v737_v23 = vmax.f32 %v679_v16, 0.0 }
 0x107   : > { %v719_v25 = vmax.f32 %v607_v18, 0.0  ;;  %v735_v26 = vmax.f32 %v671_v20, 0.0 }
 0x108   : > { %v749_v27 = vpack.c.bf16 %v721_v22, %v720_v21  ;;  %v2070_v28 = vpack.c.bf16 %v737_v23, %v736_v15 }
 0x109   : > { %v748_v29 = vpack.c.bf16 %v719_v25, %v718_v24  ;;  %v1704_v30 = vpop.f32.mrb[8].mxu0  ;;  %v2072_v31 = vpack.c.bf16 %v735_v26, %v734_v19  ;;  %v1720_v32 = vpop.f32.mrb[8].mxu1 }
 0x10a   : > { %v628_v33 = vadd.f32 %v1704_v30, %v2048_v38  ;;  %v619_v34 = vpop.f32.mrb[9].mxu0  ;;  %v692_v35 = vadd.f32 %v1720_v32, %v2048_v38  ;;  %v683_v36 = vpop.f32.mrb[9].mxu1 }
 0x10b   : > { %v620_v37 = vadd.f32 %v2048_v38, %v619_v34  ;;  %v1705_v39 = vpop.f32.mrb[10].mxu0  ;;  %1746 = vmatprep.mubr.bf16.mxu1 %v748_v29  ;;  %v684_v40 = vadd.f32 %v2048_v38, %v683_v36  ;;  %v1721_v41 = vpop.f32.mrb[10].mxu1 }
 0x10c   : > { %v631_v42 = vadd.f32 %v1705_v39, %v2048_v38  ;;  %v622_v43 = vpop.f32.mrb[11].mxu0  ;;  %1747 = vmatmul.mubr.bf16.gmra.mrb[20].mxu1 %v749_v27  ;;  %v740_v44 = vmax.f32 %v692_v35, 0.0  ;;  %v695_v45 = vadd.f32 %v1721_v41, %v2048_v38  ;;  %v686_v46 = vpop.f32.mrb[11].mxu1  ;;  %v724_v50 = vmax.f32 %v628_v33, 0.0 }
 0x10d   : > { %v623_v47 = vadd.f32 %v2048_v38, %v622_v43  ;;  %v738_v48 = vmax.f32 %v684_v40, 0.0  ;;  %v687_v49 = vadd.f32 %v2048_v38, %v686_v46  ;;  %v722_v53 = vmax.f32 %v620_v37, 0.0 }
 0x10e   : > { %v725_v51 = vmax.f32 %v631_v42, 0.0  ;;  %v741_v52 = vmax.f32 %v695_v45, 0.0 }
 0x10f   : > { %v723_v54 = vmax.f32 %v623_v47, 0.0  ;;  %v739_v55 = vmax.f32 %v687_v49, 0.0 }
 0x110   : > { %v751_v56 = vpack.c.bf16 %v725_v51, %v724_v50  ;;  %v759_v57 = vpack.c.bf16 %v741_v52, %v740_v44 }
 0x111   : > { %v750_v58 = vpack.c.bf16 %v723_v54, %v722_v53  ;;  %v1708_v59 = vpop.f32.mrb[12].mxu0  ;;  %v758_v60 = vpack.c.bf16 %v739_v55, %v738_v48  ;;  %v1724_v61 = vpop.f32.mrb[12].mxu1 }
 0x112   : > { %v644_v62 = vadd.f32 %v1708_v59, %v2048_v38  ;;  %v635_v63 = vpop.f32.mrb[13].mxu0  ;;  %v708_v1 = vadd.f32 %v1724_v61, %v2048_v38  ;;  %v699_v2 = vpop.f32.mrb[13].mxu1 }
 0x113   : > { %v636_v4 = vadd.f32 %v2048_v38, %v635_v63  ;;  %v1709_v5 = vpop.f32.mrb[14].mxu0  ;;  %1750 = vmatprep.mubr.bf16.mxu1 %v750_v58  ;;  %v700_v6 = vadd.f32 %v2048_v38, %v699_v2  ;;  %v1725_v7 = vpop.f32.mrb[14].mxu1 }
 0x114   : > { %v647_v8 = vadd.f32 %v1709_v5, %v2048_v38  ;;  %v638_v9 = vpop.f32.mrb[15].mxu0  ;;  %1751 = vmatmul.mubr.bf16.gmra.mrb[24].mxu1 %v751_v56  ;;  %v744_v10 = vmax.f32 %v708_v1, 0.0  ;;  %v711_v11 = vadd.f32 %v1725_v7, %v2048_v38  ;;  %v702_v12 = vpop.f32.mrb[15].mxu1  ;;  %v728_v16 = vmax.f32 %v644_v62, 0.0 }
 0x115   : > { %v639_v13 = vadd.f32 %v2048_v38, %v638_v9  ;;  %v742_v14 = vmax.f32 %v700_v6, 0.0  ;;  %v703_v15 = vadd.f32 %v2048_v38, %v702_v12  ;;  %v726_v19 = vmax.f32 %v636_v4, 0.0  ;;  %v1884_v38 = vld [vmem:[%s2228_s5 + $0x30] sm:$0xff]  }
 0x116   : > { %v729_v17 = vmax.f32 %v647_v8, 0.0  ;;  %v745_v18 = vmax.f32 %v711_v11, 0.0  ;;  %1786 = vmatprep.subr.bf16.mxu0 %v1884_v38 }
 0x117   : > { %v727_v20 = vmax.f32 %v639_v13, 0.0  ;;  %v743_v21 = vmax.f32 %v703_v15, 0.0  ;;  %1787 = vmatpush3.bf16.msra.mxu0 %v1884_v38 }
 0x118   : > { %v753_v22 = vpack.c.bf16 %v729_v17, %v728_v16  ;;  %v761_v23 = vpack.c.bf16 %v745_v18, %v744_v10 }
 0x119   : > { %v752_v24 = vpack.c.bf16 %v727_v20, %v726_v19  ;;  %v760_v25 = vpack.c.bf16 %v743_v21, %v742_v14 }
 0x11b   : > { %1754 = vmatprep.mubr.bf16.mxu1 %v752_v24 }
 0x11c   : > { %1755 = vmatmul.mubr.bf16.gmra.mrb[28].mxu1 %v753_v22 }
 0x11d   : > { %1758 = vmatprep.mubr.bf16.mxu1 %v2060_v3  ;;  %v1885_v3 = vld [vmem:[%s2228_s5 + $0x38] sm:$0xff]  }
 0x11e   : > { %1788 = vmatprep.subr.bf16.mxu0 %v1885_v3 }
 0x11f   : > { %1789 = vmatpush3.bf16.msra.mxu0 %v1885_v3 }
 0x124   : > { %1759 = vmatmul.mubr.bf16.gmra.mrb[32].mxu1 %v2058_v0  ;;  %v2103_v0 = vld [vmem:[%s2227_s4] ss:$0 sm:$0xff] }
 0x125   : > { %1762 = vmatprep.mubr.bf16.mxu1 %v2072_v31 }
 0x12c   : > { %1763 = vmatmul.mubr.bf16.gmra.mrb[36].mxu1 %v2070_v28 }
 0x12d   : > { %1766 = vmatprep.mubr.bf16.mxu1 %v758_v60 }
 0x134   : > { %1767 = vmatmul.mubr.bf16.gmra.mrb[40].mxu1 %v759_v57 }
 0x135   : > { %1770 = vmatprep.mubr.bf16.mxu1 %v760_v25 }
 0x13c   : > { %1771 = vmatmul.mubr.bf16.gmra.mrb[44].mxu1 %v761_v23 }
 0x1d7   : > { %v1744_v26 = vpop.f32.mrb[16].mxu1 }
 0x1d8   : > { %v876_v27 = vadd.f32 %v1744_v26, %v2103_v0  ;;  %v867_v28 = vpop.f32.mrb[17].mxu1 }
 0x1d9   : > { %v868_v29 = vadd.f32 %v2103_v0, %v867_v28  ;;  %v1745_v30 = vpop.f32.mrb[18].mxu1 }
 0x1da   : > { %v879_v31 = vadd.f32 %v1745_v30, %v2103_v0  ;;  %v870_v32 = vpop.f32.mrb[19].mxu1  ;;  %v996_v34 = vmax.f32 %v876_v27, 0.0 }
 0x1db   : > { %v871_v33 = vadd.f32 %v2103_v0, %v870_v32  ;;  %v994_v36 = vmax.f32 %v868_v29, 0.0 }
 0x1dc   : > { %v997_v35 = vmax.f32 %v879_v31, 0.0 }
 0x1dd   : > { %v995_v37 = vmax.f32 %v871_v33, 0.0 }
 0x1de   : > { %v1027_v39 = vpack.c.bf16 %v997_v35, %v996_v34 }
 0x1df   : > { %v1026_v40 = vpack.c.bf16 %v995_v37, %v994_v36  ;;  %v1748_v41 = vpop.f32.mrb[20].mxu1 }
 0x1e0   : > { %v892_v42 = vadd.f32 %v1748_v41, %v2103_v0  ;;  %v883_v43 = vpop.f32.mrb[21].mxu1 }
 0x1e1   : > { %v884_v44 = vadd.f32 %v2103_v0, %v883_v43  ;;  %v1749_v45 = vpop.f32.mrb[22].mxu1  ;;  %1790 = vmatprep.mubr.bf16.mxu0 %v1026_v40 }
 0x1e2   : > { %v895_v46 = vadd.f32 %v1749_v45, %v2103_v0  ;;  %v886_v47 = vpop.f32.mrb[23].mxu1  ;;  %1791 = vmatmul.mubr.bf16.vlgmr.msra.gmra.mrb[16].mxu0 %v1027_v39  ;;  %v1000_v49 = vmax.f32 %v892_v42, 0.0 }
 0x1e3   : > { %v887_v48 = vadd.f32 %v2103_v0, %v886_v47  ;;  %v998_v51 = vmax.f32 %v884_v44, 0.0 }
 0x1e4   : > { %v1001_v50 = vmax.f32 %v895_v46, 0.0 }
 0x1e5   : > { %v999_v52 = vmax.f32 %v887_v48, 0.0 }
 0x1e6   : > { %v1029_v53 = vpack.c.bf16 %v1001_v50, %v1000_v49 }
 0x1e7   : > { %v1028_v54 = vpack.c.bf16 %v999_v52, %v998_v51  ;;  %v1752_v55 = vpop.f32.mrb[24].mxu1 }
 0x1e8   : > { %v908_v56 = vadd.f32 %v1752_v55, %v2103_v0  ;;  %v899_v57 = vpop.f32.mrb[25].mxu1 }
 0x1e9   : > { %v900_v58 = vadd.f32 %v2103_v0, %v899_v57  ;;  %v1753_v59 = vpop.f32.mrb[26].mxu1  ;;  %1794 = vmatprep.mubr.bf16.mxu0 %v1028_v54 }
 0x1ea   : > { %v911_v60 = vadd.f32 %v1753_v59, %v2103_v0  ;;  %v902_v61 = vpop.f32.mrb[27].mxu1  ;;  %1795 = vmatmul.mubr.bf16.gmra.mrb[20].mxu0 %v1029_v53  ;;  %v1004_v63 = vmax.f32 %v908_v56, 0.0 }
 0x1eb   : > { %v903_v62 = vadd.f32 %v2103_v0, %v902_v61  ;;  %v1002_v2 = vmax.f32 %v900_v58, 0.0 }
 0x1ec   : > { %v1005_v1 = vmax.f32 %v911_v60, 0.0 }
 0x1ed   : > { %v1003_v4 = vmax.f32 %v903_v62, 0.0 }
 0x1ee   : > { %v1031_v5 = vpack.c.bf16 %v1005_v1, %v1004_v63 }
 0x1ef   : > { %v1030_v6 = vpack.c.bf16 %v1003_v4, %v1002_v2  ;;  %v1756_v7 = vpop.f32.mrb[28].mxu1 }
 0x1f0   : > { %v924_v8 = vadd.f32 %v1756_v7, %v2103_v0  ;;  %v915_v9 = vpop.f32.mrb[29].mxu1 }
 0x1f1   : > { %v916_v10 = vadd.f32 %v2103_v0, %v915_v9  ;;  %v1757_v11 = vpop.f32.mrb[30].mxu1  ;;  %1798 = vmatprep.mubr.bf16.mxu0 %v1030_v6 }
 0x1f2   : > { %v927_v12 = vadd.f32 %v1757_v11, %v2103_v0  ;;  %v918_v13 = vpop.f32.mrb[31].mxu1  ;;  %1799 = vmatmul.mubr.bf16.gmra.mrb[24].mxu0 %v1031_v5  ;;  %v1008_v15 = vmax.f32 %v924_v8, 0.0 }
 0x1f3   : > { %v919_v14 = vadd.f32 %v2103_v0, %v918_v13  ;;  %v1006_v17 = vmax.f32 %v916_v10, 0.0 }
 0x1f4   : > { %v1009_v16 = vmax.f32 %v927_v12, 0.0 }
 0x1f5   : > { %v1007_v18 = vmax.f32 %v919_v14, 0.0  ;;  %v2140_v14 = vld [vmem:[%s2229_s6] ss:$0 sm:$0xff] }
 0x1f6   : > { %v1033_v19 = vpack.c.bf16 %v1009_v16, %v1008_v15 }
 0x1f7   : > { %v1032_v20 = vpack.c.bf16 %v1007_v18, %v1006_v17  ;;  %v1760_v21 = vpop.f32.mrb[32].mxu1 }
 0x1f8   : > { %v940_v22 = vadd.f32 %v1760_v21, %v2103_v0  ;;  %v931_v23 = vpop.f32.mrb[33].mxu1 }
 0x1f9   : > { %v932_v24 = vadd.f32 %v2103_v0, %v931_v23  ;;  %v1761_v25 = vpop.f32.mrb[34].mxu1  ;;  %1802 = vmatprep.mubr.bf16.mxu0 %v1032_v20 }
 0x1fa   : > { %v943_v38 = vadd.f32 %v1761_v25, %v2103_v0  ;;  %v934_v3 = vpop.f32.mrb[35].mxu1  ;;  %1803 = vmatmul.mubr.bf16.gmra.mrb[28].mxu0 %v1033_v19  ;;  %v1012_v27 = vmax.f32 %v940_v22, 0.0 }
 0x1fb   : > { %v935_v26 = vadd.f32 %v2103_v0, %v934_v3  ;;  %v1010_v29 = vmax.f32 %v932_v24, 0.0 }
 0x1fc   : > { %v1013_v28 = vmax.f32 %v943_v38, 0.0 }
 0x1fd   : > { %v1011_v30 = vmax.f32 %v935_v26, 0.0 }
 0x1fe   : > { %v1035_v31 = vpack.c.bf16 %v1013_v28, %v1012_v27 }
 0x1ff   : > { %v1034_v32 = vpack.c.bf16 %v1011_v30, %v1010_v29  ;;  %v1764_v33 = vpop.f32.mrb[36].mxu1 }
 0x200   : > { %v956_v34 = vadd.f32 %v1764_v33, %v2103_v0  ;;  %v947_v35 = vpop.f32.mrb[37].mxu1 }
 0x201   : > { %v948_v36 = vadd.f32 %v2103_v0, %v947_v35  ;;  %v1765_v37 = vpop.f32.mrb[38].mxu1  ;;  %1806 = vmatprep.mubr.bf16.mxu0 %v1034_v32 }
 0x202   : > { %v959_v39 = vadd.f32 %v1765_v37, %v2103_v0  ;;  %v950_v40 = vpop.f32.mrb[39].mxu1  ;;  %1807 = vmatmul.mubr.bf16.gmra.mrb[32].mxu0 %v1035_v31  ;;  %v1016_v42 = vmax.f32 %v956_v34, 0.0 }
 0x203   : > { %v951_v41 = vadd.f32 %v2103_v0, %v950_v40  ;;  %v1014_v44 = vmax.f32 %v948_v36, 0.0 }
 0x204   : > { %v1017_v43 = vmax.f32 %v959_v39, 0.0 }
 0x205   : > { %v1015_v45 = vmax.f32 %v951_v41, 0.0 }
 0x206   : > { %v1037_v46 = vpack.c.bf16 %v1017_v43, %v1016_v42 }
 0x207   : > { %v1036_v47 = vpack.c.bf16 %v1015_v45, %v1014_v44  ;;  %v1768_v48 = vpop.f32.mrb[40].mxu1 }
 0x208   : > { %v972_v49 = vadd.f32 %v1768_v48, %v2103_v0  ;;  %v963_v50 = vpop.f32.mrb[41].mxu1 }
 0x209   : > { %v964_v51 = vadd.f32 %v2103_v0, %v963_v50  ;;  %v1769_v52 = vpop.f32.mrb[42].mxu1  ;;  %1810 = vmatprep.mubr.bf16.mxu0 %v1036_v47 }
 0x20a   : > { %v975_v53 = vadd.f32 %v1769_v52, %v2103_v0  ;;  %v966_v54 = vpop.f32.mrb[43].mxu1  ;;  %1811 = vmatmul.mubr.bf16.gmra.mrb[36].mxu0 %v1037_v46  ;;  %v1020_v56 = vmax.f32 %v972_v49, 0.0 }
 0x20b   : > { %v967_v55 = vadd.f32 %v2103_v0, %v966_v54  ;;  %v1018_v58 = vmax.f32 %v964_v51, 0.0 }
 0x20c   : > { %v1021_v57 = vmax.f32 %v975_v53, 0.0 }
 0x20d   : > { %v1019_v59 = vmax.f32 %v967_v55, 0.0 }
 0x20e   : > { %v1039_v60 = vpack.c.bf16 %v1021_v57, %v1020_v56 }
 0x20f   : > { %v1038_v61 = vpack.c.bf16 %v1019_v59, %v1018_v58  ;;  %v1772_v62 = vpop.f32.mrb[44].mxu1 }
 0x210   : > { %v988_v63 = vadd.f32 %v1772_v62, %v2103_v0  ;;  %v979_v1 = vpop.f32.mrb[45].mxu1 }
 0x211   : > { %v980_v2 = vadd.f32 %v2103_v0, %v979_v1  ;;  %v1773_v4 = vpop.f32.mrb[46].mxu1  ;;  %1814 = vmatprep.mubr.bf16.mxu0 %v1038_v61 }
 0x212   : > { %v991_v5 = vadd.f32 %v1773_v4, %v2103_v0  ;;  %v982_v6 = vpop.f32.mrb[47].mxu1  ;;  %1815 = vmatmul.mubr.bf16.gmra.mrb[40].mxu0 %v1039_v60  ;;  %v1024_v8 = vmax.f32 %v988_v63, 0.0 }
 0x213   : > { %v983_v7 = vadd.f32 %v2103_v0, %v982_v6  ;;  %v1022_v10 = vmax.f32 %v980_v2, 0.0 }
 0x214   : > { %v1025_v9 = vmax.f32 %v991_v5, 0.0 }
 0x215   : > { %v1023_v11 = vmax.f32 %v983_v7, 0.0 }
 0x216   : > { %v1041_v12 = vpack.c.bf16 %v1025_v9, %v1024_v8 }
 0x217   : > { %v1040_v13 = vpack.c.bf16 %v1023_v11, %v1022_v10 }
 0x219   : > { %1818 = vmatprep.mubr.bf16.mxu0 %v1040_v13 }
 0x21a   : > { %1819 = vmatmul.mubr.bf16.gmra.mrb[44].mxu0 %v1041_v12 }
 0x2b5   : > { %v1792_v15 = vpop.f32.mrb[16].mxu0 }
 0x2b6   : > { %v1156_v16 = vadd.f32 %v1792_v15, %v2140_v14  ;;  %v1147_v17 = vpop.f32.mrb[17].mxu0 }
 0x2b7   : > { %v1148_v0 = vadd.f32 %v2140_v14, %v1147_v17  ;;  %v1793_v18 = vpop.f32.mrb[18].mxu0 }
 0x2b8   : > { %v1276_v19 = vmax.f32 %v1156_v16, 0.0  ;;  %v1159_v20 = vadd.f32 %v1793_v18, %v2140_v14  ;;  %v1150_v21 = vpop.f32.mrb[19].mxu0 }
 0x2b9   : > { %v1274_v22 = vmax.f32 %v1148_v0, 0.0  ;;  %v1151_v23 = vadd.f32 %v2140_v14, %v1150_v21 }
 0x2ba   : > { %1308 = vst [vmem:[%s2147_s19 + $0x10] sm:$0xff] %v1276_v19  ;;  %v1277_v24 = vmax.f32 %v1159_v20, 0.0  ;;  %v1378_v30 = vmul.f32 %v1276_v19, %v1276_v19 }
 0x2bb   : > { %1306 = vst [vmem:[%s2147_s19] sm:$0xff] %v1274_v22  ;;  %v1275_v25 = vmax.f32 %v1151_v23, 0.0  ;;  %v1376_v38 = vmul.f32 %v1274_v22, %v1274_v22 }
 0x2bc   : > { %1309 = vst [vmem:[%s2147_s19 + $0x18] sm:$0xff] %v1277_v24  ;;  %v1379_v35 = vmul.f32 %v1277_v24, %v1277_v24 }
 0x2bd   : > { %1307 = vst [vmem:[%s2147_s19 + $0x8] sm:$0xff] %v1275_v25  ;;  %v1338_v3 = vadd.f32 %v1275_v25, %v1274_v22  ;;  %v1377_v26 = vmul.f32 %v1275_v25, %v1275_v25  ;;  %v1796_v27 = vpop.f32.mrb[20].mxu0 }
 0x2be   : > { %v1172_v28 = vadd.f32 %v1796_v27, %v2140_v14  ;;  %v1163_v29 = vpop.f32.mrb[21].mxu0 }
 0x2bf   : > { %v1339_v31 = vadd.f32 %v1338_v3, %v1276_v19  ;;  %v1408_v32 = vadd.f32 %v1377_v26, %v1376_v38  ;;  %v1164_v33 = vadd.f32 %v2140_v14, %v1163_v29  ;;  %v1797_v34 = vpop.f32.mrb[22].mxu0 }
 0x2c0   : > { %v1280_v36 = vmax.f32 %v1172_v28, 0.0  ;;  %v1175_v37 = vadd.f32 %v1797_v34, %v2140_v14  ;;  %v1166_v39 = vpop.f32.mrb[23].mxu0 }
 0x2c1   : > { %v1409_v40 = vadd.f32 %v1408_v32, %v1378_v30  ;;  %v1278_v41 = vmax.f32 %v1164_v33, 0.0  ;;  %v1340_v42 = vadd.f32 %v1339_v31, %v1277_v24  ;;  %v1167_v43 = vadd.f32 %v2140_v14, %v1166_v39 }
 0x2c2   : > { %1312 = vst [vmem:[%s2147_s19 + $0x30] sm:$0xff] %v1280_v36  ;;  %v1281_v44 = vmax.f32 %v1175_v37, 0.0  ;;  %v1382_v55 = vmul.f32 %v1280_v36, %v1280_v36 }
 0x2c3   : > { %1310 = vst [vmem:[%s2147_s19 + $0x20] sm:$0xff] %v1278_v41  ;;  %v1341_v45 = vadd.f32 %v1340_v42, %v1278_v41  ;;  %v1380_v46 = vmul.f32 %v1278_v41, %v1278_v41  ;;  %v1410_v47 = vadd.f32 %v1409_v40, %v1379_v35  ;;  %v1279_v48 = vmax.f32 %v1167_v43, 0.0 }
 0x2c4   : > { %1313 = vst [vmem:[%s2147_s19 + $0x38] sm:$0xff] %v1281_v44  ;;  %v1383_v60 = vmul.f32 %v1281_v44, %v1281_v44 }
 0x2c5   : > { %v1411_v49 = vadd.f32 %v1410_v47, %v1380_v46  ;;  %1311 = vst [vmem:[%s2147_s19 + $0x28] sm:$0xff] %v1279_v48  ;;  %v1342_v50 = vadd.f32 %v1341_v45, %v1279_v48  ;;  %v1381_v51 = vmul.f32 %v1279_v48, %v1279_v48  ;;  %v1800_v52 = vpop.f32.mrb[24].mxu0 }
 0x2c6   : > { %v1188_v53 = vadd.f32 %v1800_v52, %v2140_v14  ;;  %v1179_v54 = vpop.f32.mrb[25].mxu0 }
 0x2c7   : > { %v1343_v56 = vadd.f32 %v1342_v50, %v1280_v36  ;;  %v1412_v57 = vadd.f32 %v1411_v49, %v1381_v51  ;;  %v1180_v58 = vadd.f32 %v2140_v14, %v1179_v54  ;;  %v1801_v59 = vpop.f32.mrb[26].mxu0 }
 0x2c8   : > { %v1284_v61 = vmax.f32 %v1188_v53, 0.0  ;;  %v1191_v62 = vadd.f32 %v1801_v59, %v2140_v14  ;;  %v1182_v63 = vpop.f32.mrb[27].mxu0 }
 0x2c9   : > { %v1413_v1 = vadd.f32 %v1412_v57, %v1382_v55  ;;  %v1282_v2 = vmax.f32 %v1180_v58, 0.0  ;;  %v1344_v4 = vadd.f32 %v1343_v56, %v1281_v44  ;;  %v1183_v5 = vadd.f32 %v2140_v14, %v1182_v63 }
 0x2ca   : > { %1316 = vst [vmem:[%s2147_s19 + $0x50] sm:$0xff] %v1284_v61  ;;  %v1285_v6 = vmax.f32 %v1191_v62, 0.0  ;;  %v1386_v0 = vmul.f32 %v1284_v61, %v1284_v61 }
 0x2cb   : > { %1314 = vst [vmem:[%s2147_s19 + $0x40] sm:$0xff] %v1282_v2  ;;  %v1345_v7 = vadd.f32 %v1344_v4, %v1282_v2  ;;  %v1384_v8 = vmul.f32 %v1282_v2, %v1282_v2  ;;  %v1414_v9 = vadd.f32 %v1413_v1, %v1383_v60  ;;  %v1283_v10 = vmax.f32 %v1183_v5, 0.0 }
 0x2cc   : > { %1317 = vst [vmem:[%s2147_s19 + $0x58] sm:$0xff] %v1285_v6  ;;  %v1387_v22 = vmul.f32 %v1285_v6, %v1285_v6 }
 0x2cd   : > { %v1415_v11 = vadd.f32 %v1414_v9, %v1384_v8  ;;  %1315 = vst [vmem:[%s2147_s19 + $0x48] sm:$0xff] %v1283_v10  ;;  %v1346_v12 = vadd.f32 %v1345_v7, %v1283_v10  ;;  %v1385_v13 = vmul.f32 %v1283_v10, %v1283_v10  ;;  %v1804_v15 = vpop.f32.mrb[28].mxu0 }
 0x2ce   : > { %v1204_v16 = vadd.f32 %v1804_v15, %v2140_v14  ;;  %v1195_v17 = vpop.f32.mrb[29].mxu0 }
 0x2cf   : > { %v1347_v18 = vadd.f32 %v1346_v12, %v1284_v61  ;;  %v1416_v19 = vadd.f32 %v1415_v11, %v1385_v13  ;;  %v1196_v20 = vadd.f32 %v2140_v14, %v1195_v17  ;;  %v1805_v21 = vpop.f32.mrb[30].mxu0 }
 0x2d0   : > { %v1288_v23 = vmax.f32 %v1204_v16, 0.0  ;;  %v1207_v24 = vadd.f32 %v1805_v21, %v2140_v14  ;;  %v1198_v25 = vpop.f32.mrb[31].mxu0 }
 0x2d1   : > { %v1417_v38 = vadd.f32 %v1416_v19, %v1386_v0  ;;  %v1286_v3 = vmax.f32 %v1196_v20, 0.0  ;;  %v1348_v26 = vadd.f32 %v1347_v18, %v1285_v6  ;;  %v1199_v27 = vadd.f32 %v2140_v14, %v1198_v25 }
 0x2d2   : > { %1320 = vst [vmem:[%s2147_s19 + $0x70] sm:$0xff] %v1288_v23  ;;  %v1289_v28 = vmax.f32 %v1207_v24, 0.0  ;;  %v1390_v40 = vmul.f32 %v1288_v23, %v1288_v23 }
 0x2d3   : > { %1318 = vst [vmem:[%s2147_s19 + $0x60] sm:$0xff] %v1286_v3  ;;  %v1349_v29 = vadd.f32 %v1348_v26, %v1286_v3  ;;  %v1388_v30 = vmul.f32 %v1286_v3, %v1286_v3  ;;  %v1418_v31 = vadd.f32 %v1417_v38, %v1387_v22  ;;  %v1287_v32 = vmax.f32 %v1199_v27, 0.0 }
 0x2d4   : > { %1321 = vst [vmem:[%s2147_s19 + $0x78] sm:$0xff] %v1289_v28  ;;  %v1391_v45 = vmul.f32 %v1289_v28, %v1289_v28 }
 0x2d5   : > { %v1419_v33 = vadd.f32 %v1418_v31, %v1388_v30  ;;  %1319 = vst [vmem:[%s2147_s19 + $0x68] sm:$0xff] %v1287_v32  ;;  %v1350_v34 = vadd.f32 %v1349_v29, %v1287_v32  ;;  %v1389_v35 = vmul.f32 %v1287_v32, %v1287_v32  ;;  %v1808_v36 = vpop.f32.mrb[32].mxu0 }
 0x2d6   : > { %v1220_v37 = vadd.f32 %v1808_v36, %v2140_v14  ;;  %v1211_v39 = vpop.f32.mrb[33].mxu0 }
 0x2d7   : > { %v1351_v41 = vadd.f32 %v1350_v34, %v1288_v23  ;;  %v1420_v42 = vadd.f32 %v1419_v33, %v1389_v35  ;;  %v1212_v43 = vadd.f32 %v2140_v14, %v1211_v39  ;;  %v1809_v44 = vpop.f32.mrb[34].mxu0 }
 0x2d8   : > { %v1292_v46 = vmax.f32 %v1220_v37, 0.0  ;;  %v1223_v47 = vadd.f32 %v1809_v44, %v2140_v14  ;;  %v1214_v48 = vpop.f32.mrb[35].mxu0 }
 0x2d9   : > { %v1421_v49 = vadd.f32 %v1420_v42, %v1390_v40  ;;  %v1290_v50 = vmax.f32 %v1212_v43, 0.0  ;;  %v1352_v51 = vadd.f32 %v1351_v41, %v1289_v28  ;;  %v1215_v52 = vadd.f32 %v2140_v14, %v1214_v48 }
 0x2da   : > { %1324 = vst [vmem:[%s2147_s19 + $0x90] sm:$0xff] %v1292_v46  ;;  %v1293_v53 = vmax.f32 %v1223_v47, 0.0  ;;  %v1394_v1 = vmul.f32 %v1292_v46, %v1292_v46 }
 0x2db   : > { %1322 = vst [vmem:[%s2147_s19 + $0x80] sm:$0xff] %v1290_v50  ;;  %v1353_v54 = vadd.f32 %v1352_v51, %v1290_v50  ;;  %v1392_v55 = vmul.f32 %v1290_v50, %v1290_v50  ;;  %v1422_v56 = vadd.f32 %v1421_v49, %v1391_v45  ;;  %v1291_v57 = vmax.f32 %v1215_v52, 0.0 }
 0x2dc   : > { %1325 = vst [vmem:[%s2147_s19 + $0x98] sm:$0xff] %v1293_v53  ;;  %v1395_v7 = vmul.f32 %v1293_v53, %v1293_v53 }
 0x2dd   : > { %v1423_v58 = vadd.f32 %v1422_v56, %v1392_v55  ;;  %1323 = vst [vmem:[%s2147_s19 + $0x88] sm:$0xff] %v1291_v57  ;;  %v1354_v59 = vadd.f32 %v1353_v54, %v1291_v57  ;;  %v1393_v60 = vmul.f32 %v1291_v57, %v1291_v57  ;;  %v1812_v61 = vpop.f32.mrb[36].mxu0 }
 0x2de   : > { %v1236_v62 = vadd.f32 %v1812_v61, %v2140_v14  ;;  %v1227_v63 = vpop.f32.mrb[37].mxu0 }
 0x2df   : > { %v1355_v2 = vadd.f32 %v1354_v59, %v1292_v46  ;;  %v1424_v4 = vadd.f32 %v1423_v58, %v1393_v60  ;;  %v1228_v5 = vadd.f32 %v2140_v14, %v1227_v63  ;;  %v1813_v6 = vpop.f32.mrb[38].mxu0 }
 0x2e0   : > { %v1296_v8 = vmax.f32 %v1236_v62, 0.0  ;;  %v1239_v9 = vadd.f32 %v1813_v6, %v2140_v14  ;;  %v1230_v10 = vpop.f32.mrb[39].mxu0 }
 0x2e1   : > { %v1425_v11 = vadd.f32 %v1424_v4, %v1394_v1  ;;  %v1294_v12 = vmax.f32 %v1228_v5, 0.0  ;;  %v1356_v13 = vadd.f32 %v1355_v2, %v1293_v53  ;;  %v1231_v15 = vadd.f32 %v2140_v14, %v1230_v10 }
 0x2e2   : > { %1328 = vst [vmem:[%s2147_s19 + $0xb0] sm:$0xff] %v1296_v8  ;;  %v1297_v16 = vmax.f32 %v1239_v9, 0.0  ;;  %v1398_v38 = vmul.f32 %v1296_v8, %v1296_v8 }
 0x2e3   : > { %1326 = vst [vmem:[%s2147_s19 + $0xa0] sm:$0xff] %v1294_v12  ;;  %v1357_v17 = vadd.f32 %v1356_v13, %v1294_v12  ;;  %v1396_v0 = vmul.f32 %v1294_v12, %v1294_v12  ;;  %v1426_v18 = vadd.f32 %v1425_v11, %v1395_v7  ;;  %v1295_v19 = vmax.f32 %v1231_v15, 0.0 }
 0x2e4   : > { %1329 = vst [vmem:[%s2147_s19 + $0xb8] sm:$0xff] %v1297_v16  ;;  %v1399_v29 = vmul.f32 %v1297_v16, %v1297_v16 }
 0x2e5   : > { %v1427_v20 = vadd.f32 %v1426_v18, %v1396_v0  ;;  %1327 = vst [vmem:[%s2147_s19 + $0xa8] sm:$0xff] %v1295_v19  ;;  %v1358_v21 = vadd.f32 %v1357_v17, %v1295_v19  ;;  %v1397_v22 = vmul.f32 %v1295_v19, %v1295_v19  ;;  %v1816_v23 = vpop.f32.mrb[40].mxu0 }
 0x2e6   : > { %v1252_v24 = vadd.f32 %v1816_v23, %v2140_v14  ;;  %v1243_v25 = vpop.f32.mrb[41].mxu0 }
 0x2e7   : > { %v1359_v3 = vadd.f32 %v1358_v21, %v1296_v8  ;;  %v1428_v26 = vadd.f32 %v1427_v20, %v1397_v22  ;;  %v1244_v27 = vadd.f32 %v2140_v14, %v1243_v25  ;;  %v1817_v28 = vpop.f32.mrb[42].mxu0 }
 0x2e8   : > { %v1300_v30 = vmax.f32 %v1252_v24, 0.0  ;;  %v1255_v31 = vadd.f32 %v1817_v28, %v2140_v14  ;;  %v1246_v32 = vpop.f32.mrb[43].mxu0 }
 0x2e9   : > { %v1429_v33 = vadd.f32 %v1428_v26, %v1398_v38  ;;  %v1298_v34 = vmax.f32 %v1244_v27, 0.0  ;;  %v1360_v35 = vadd.f32 %v1359_v3, %v1297_v16  ;;  %v1247_v36 = vadd.f32 %v2140_v14, %v1246_v32 }
 0x2ea   : > { %1332 = vst [vmem:[%s2147_s19 + $0xd0] sm:$0xff] %v1300_v30  ;;  %v1301_v37 = vmax.f32 %v1255_v31, 0.0  ;;  %v1402_v49 = vmul.f32 %v1300_v30, %v1300_v30 }
 0x2eb   : > { %1330 = vst [vmem:[%s2147_s19 + $0xc0] sm:$0xff] %v1298_v34  ;;  %v1361_v39 = vadd.f32 %v1360_v35, %v1298_v34  ;;  %v1400_v40 = vmul.f32 %v1298_v34, %v1298_v34  ;;  %v1430_v41 = vadd.f32 %v1429_v33, %v1399_v29  ;;  %v1299_v42 = vmax.f32 %v1247_v36, 0.0 }
 0x2ec   : > { %1333 = vst [vmem:[%s2147_s19 + $0xd8] sm:$0xff] %v1301_v37  ;;  %v1403_v54 = vmul.f32 %v1301_v37, %v1301_v37 }
 0x2ed   : > { %v1431_v43 = vadd.f32 %v1430_v41, %v1400_v40  ;;  %1331 = vst [vmem:[%s2147_s19 + $0xc8] sm:$0xff] %v1299_v42  ;;  %v1362_v44 = vadd.f32 %v1361_v39, %v1299_v42  ;;  %v1401_v45 = vmul.f32 %v1299_v42, %v1299_v42  ;;  %v1820_v46 = vpop.f32.mrb[44].mxu0 }
 0x2ee   : > { %v1268_v47 = vadd.f32 %v1820_v46, %v2140_v14  ;;  %v1259_v48 = vpop.f32.mrb[45].mxu0 }
 0x2ef   : > { %v1363_v50 = vadd.f32 %v1362_v44, %v1300_v30  ;;  %v1432_v51 = vadd.f32 %v1431_v43, %v1401_v45  ;;  %v1260_v52 = vadd.f32 %v2140_v14, %v1259_v48  ;;  %v1821_v53 = vpop.f32.mrb[46].mxu0 }
 0x2f0   : > { %v1304_v55 = vmax.f32 %v1268_v47, 0.0  ;;  %v1271_v56 = vadd.f32 %v1821_v53, %v2140_v14  ;;  %v1262_v57 = vpop.f32.mrb[47].mxu0 }
 0x2f1   : > { %v1433_v58 = vadd.f32 %v1432_v51, %v1402_v49  ;;  %v1302_v59 = vmax.f32 %v1260_v52, 0.0  ;;  %v1364_v60 = vadd.f32 %v1363_v50, %v1301_v37  ;;  %v1263_v61 = vadd.f32 %v2140_v14, %v1262_v57 }
 0x2f2   : > { %1336 = vst [vmem:[%s2147_s19 + $0xf0] sm:$0xff] %v1304_v55  ;;  %v1305_v62 = vmax.f32 %v1271_v56, 0.0  ;;  %v1406_v8 = vmul.f32 %v1304_v55, %v1304_v55 }
 0x2f3   : > { %1334 = vst [vmem:[%s2147_s19 + $0xe0] sm:$0xff] %v1302_v59  ;;  %v1365_v63 = vadd.f32 %v1364_v60, %v1302_v59  ;;  %v1404_v1 = vmul.f32 %v1302_v59, %v1302_v59  ;;  %v1434_v2 = vadd.f32 %v1433_v58, %v1403_v54  ;;  %v1303_v4 = vmax.f32 %v1263_v61, 0.0 }
 0x2f4   : > { %1337 = vst [vmem:[%s2147_s19 + $0xf8] sm:$0xff] %v1305_v62  ;;  %v1407_v11 = vmul.f32 %v1305_v62, %v1305_v62 }
 0x2f5   : > { %v1435_v5 = vadd.f32 %v1434_v2, %v1404_v1  ;;  %1335 = vst [vmem:[%s2147_s19 + $0xe8] sm:$0xff] %v1303_v4  ;;  %v1366_v6 = vadd.f32 %v1365_v63, %v1303_v4  ;;  %v1405_v7 = vmul.f32 %v1303_v4, %v1303_v4 }
 0x2f7   : > { %v1367_v9 = vadd.f32 %v1366_v6, %v1304_v55  ;;  %v1436_v10 = vadd.f32 %v1435_v5, %v1405_v7 }
 0x2f9   : > { %v1368_v12 = vadd.f32 %v1367_v9, %v1305_v62  ;;  %v1437_v14 = vadd.f32 %v1436_v10, %v1406_v8 }
 0x2fb   : > { %v1369_v13 = vrot.slane %v1368_v12, 4  ;;  %v1438_v15 = vadd.f32 %v1437_v14, %v1407_v11 }
 0x2fd   : > { %v1370_v16 = vadd.f32 %v1369_v13, %v1368_v12  ;;  %v1439_v17 = vrot.slane %v1438_v15, 4 }
 0x2ff   : > { %v1371_v0 = vrot.slane %v1370_v16, 2  ;;  %v1440_v18 = vadd.f32 %v1439_v17, %v1438_v15 }
 0x301   : > { %v1372_v19 = vadd.f32 %v1371_v0, %v1370_v16  ;;  %v1441_v20 = vrot.slane %v1440_v18, 2 }
 0x303   : > { %v1373_v21 = vrot.slane %v1372_v19, 1  ;;  %v1442_v22 = vadd.f32 %v1441_v20, %v1440_v18 }
 0x305   : > { %v1374_v23 = vadd.f32 %v1373_v21, %v1372_v19  ;;  %v1443_v24 = vrot.slane %v1442_v22, 1 }
 0x307   : > { %1375 = vst [vmem:[%s349_s22] sm:$0x1] %v1374_v23  ;;  %v1444_v25 = vadd.f32 %v1443_v24, %v1442_v22 }
 0x309   : > { %1445 = vst [vmem:[%s352_s25] sm:$0x1] %v1444_v25 }
 0x30a PF: > { %s20_s30 = sadd.s32 1, %s1892_s30  }
 0x30b   : > { %p17_p5 = scmp.ge.s32.totalorder %s20_s30, 4  }
 0x30d   :  { %19 = sbr.rel (!%p17_p5) target bundleno = 1 (0x1), region = 102 }

</bundles_post_ra>
